<compile_context>
chip_gen: v7x
topology: tpu7x:2x2x1
jax: 0.10.0
libtpu: 0.0.40
codegen_flags: <defaults>
</compile_context>

<pallas_src>
import jax
import jax.numpy as jnp
from jax.experimental import pallas as pl
from jax.experimental.pallas import tpu as pltpu


def condition_denoiser_kernel(params_ref, x_ref, w_ref, y_ref, mask_ref,
                              out_ref, acc_ref):
    """Grid = (N-tiles, K-tiles).  One step accumulates a (B, tn) slab.

    params_ref : SMEM (3,)   -> [sigma, lambda_, sigma_s]
    x_ref      : VMEM (B, tk)  bf16 flattened noisy input x_t (K tile)
    w_ref      : VMEM (tk, tn) bf16 denoiser weight tile
    y_ref      : VMEM (B, tn)  f32 measurement tile
    mask_ref   : VMEM (B, tn)  f32 diagonal operator tile (A = diag(mask))
    out_ref    : VMEM (B, tn)  f32 hat_x0 tile
    acc_ref    : VMEM (B, tn)  f32 accumulator scratch (resident across K)
    """
    k = pl.program_id(1)

    @pl.when(k == 0)
    def _init():
        acc_ref[...] = jnp.zeros_like(acc_ref)

    # uncond_pred: linear denoiser x0_mean = x @ W  (bf16 MXU, f32 accumulate)
    acc_ref[...] += jnp.dot(x_ref[...], w_ref[...],
                            preferred_element_type=jnp.float32)

    @pl.when(k == pl.num_programs(1) - 1)
    def _finalize():
        sigma = params_ref[0]
        lambda_ = params_ref[1]
        sigma_s = params_ref[2]

        # DiffPIR guidance, closed-form mat_solver for a diagonal operator.
        x0_var = sigma * sigma / lambda_
        x0_mean = acc_ref[...]
        m = mask_ref[...]
        denom = m * m * x0_var + sigma_s * sigma_s
        # coef = m * x0_var / denom   (EUP approx reciprocal; denom >= sigma_s^2 > 0)
        coef = m * x0_var * pl.reciprocal(denom, approx=True)
        # hat_x0 = x0_mean + coef * (y - m * x0_mean)
        hat_x0 = x0_mean * (1.0 - coef * m) + coef * y_ref[...]

        # forward() epilogue: .clip(-1, 1)
        out_ref[...] = jnp.clip(hat_x0, -1.0, 1.0)

    # TODO(synk): autograd-based guidances (dps/pgdm/I/autoI/stsl, *+mle) and
    # the gpytorch MVN log_prob with LazyLikelihoodCovariance (iterative lazy
    # solve) are not expressible as a single Pallas kernel; only 'diffpir' is
    # lowered.


def _pick_tile(d, cap):
    """Largest multiple of 128 that divides d and is <= cap (d % 128 == 0)."""
    t = min(d, cap)
    t -= t % 128
    while t >= 128:
        if d % t == 0:
            return t
        t -= 128
    return d


def condition_denoiser_forward(x_nchw, w, y_nchw, mask_nchw,
                               sigma, lambda_, sigma_s, *, tn=None, tk=None):
    """Each row of x_nchw corresponds to one ConditionDenoiser.forward(x_i, sigma)
    call (the module itself asserts batch==1; stacking rows just amortizes the
    weight stream across more MXU rows)."""
    b, c, h, wdim = x_nchw.shape
    d = c * h * wdim
    assert d % 128 == 0, "flattened dim must be lane-aligned"

    if tn is None:
        tn = _pick_tile(d, 1024)
    if tk is None:
        tk = _pick_tile(d, 1024)
    assert d % tn == 0 and d % tk == 0
    assert tn % 128 == 0 and tk % 128 == 0

    # bf16 operands for the bandwidth-bound weight stream; epilogue stays f32.
    x_flat = x_nchw.reshape(b, d).astype(jnp.bfloat16)
    w_bf16 = w.astype(jnp.bfloat16)
    y_flat = y_nchw.reshape(b, d).astype(jnp.float32)
    mask_flat = mask_nchw.reshape(b, d).astype(jnp.float32)
    params = jnp.array([sigma, lambda_, sigma_s], dtype=jnp.float32)

    # Approximate double-buffered VMEM footprint; request a modest limit with
    # headroom, capped so it stays safe on v7x (64 MiB physical VMEM).
    tile_bytes = (2 * (b * tk * 2)            # x tile, bf16, double-buffered
                  + 2 * (tk * tn * 2)         # W tile, bf16, double-buffered
                  + 2 * 2 * (b * tn * 4)      # y + mask tiles, f32
                  + 2 * (b * tn * 4)          # out tile, f32
                  + (b * tn * 4))             # accumulator scratch, f32
    vmem_limit = int(min(max(4 * tile_bytes, 16 << 20), 48 << 20))

    grid = (d // tn, d // tk)                 # (N parallel, K reduction last)
    out = pl.pallas_call(
        condition_denoiser_kernel,
        out_shape=jax.ShapeDtypeStruct((b, d), jnp.float32),
        grid_spec=pltpu.PrefetchScalarGridSpec(
            num_scalar_prefetch=1,            # params -> SMEM
            grid=grid,
            in_specs=[
                pl.BlockSpec((b, tk), lambda j, k, p: (0, k)),    # x K-tile
                pl.BlockSpec((tk, tn), lambda j, k, p: (k, j)),   # W (tk, tn) tile
                pl.BlockSpec((b, tn), lambda j, k, p: (0, j)),    # y N-tile
                pl.BlockSpec((b, tn), lambda j, k, p: (0, j)),    # mask N-tile
            ],
            out_specs=pl.BlockSpec((b, tn), lambda j, k, p: (0, j)),
            scratch_shapes=[pltpu.VMEM((b, tn), jnp.float32)],
        ),
        compiler_params=pltpu.CompilerParams(
            dimension_semantics=("parallel", "arbitrary"),
            vmem_limit_bytes=vmem_limit),
    )(params, x_flat, w_bf16, y_flat, mask_flat)
    return out.reshape(b, c, h, wdim)


def reference_forward(x_nchw, w, y_nchw, mask_nchw, sigma, lambda_, sigma_s):
    """Pure-JAX reference with the same bf16 matmul operands (f32 accumulate)."""
    b, c, h, wdim = x_nchw.shape
    d = c * h * wdim
    x_flat = x_nchw.reshape(b, d).astype(jnp.bfloat16)
    w_bf16 = w.astype(jnp.bfloat16)
    y_flat = y_nchw.reshape(b, d).astype(jnp.float32)
    m = mask_nchw.reshape(b, d).astype(jnp.float32)
    x0_mean = jnp.dot(x_flat, w_bf16, preferred_element_type=jnp.float32)
    x0_var = sigma ** 2 / lambda_
    denom = m * m * x0_var + sigma_s ** 2
    mat = m * (y_flat - m * x0_mean) / denom
    hat = jnp.clip(x0_mean + mat * x0_var, -1.0, 1.0)
    return hat.reshape(b, c, h, wdim)


if __name__ == "__main__":
    key = jax.random.PRNGKey(0)
    k_x, k_w, k_y, k_m = jax.random.split(key, 4)

    B, C, H, W = 2, 4, 16, 16
    D = C * H * W                       # 1024

    # deterministic synthetic parameters / inputs
    # (each row of x corresponds to one forward(x_i, sigma) call)
    x = jax.random.normal(k_x, (B, C, H, W), dtype=jnp.float32)          # x_t
    # linear "denoiser" weight: near-identity + small random mixing
    w_mat = (jnp.eye(D, dtype=jnp.float32) * 0.8
             + 0.05 * jax.random.normal(k_w, (D, D), dtype=jnp.float32) / jnp.sqrt(D))
    y = jnp.broadcast_to(
        jax.random.normal(k_y, (1, C, H, W), dtype=jnp.float32) * 0.5,
        (B, C, H, W))                                                    # measurement
    mask = jnp.broadcast_to(
        (jax.random.uniform(k_m, (1, C, H, W)) > 0.5).astype(jnp.float32),
        (B, C, H, W))                                                    # inpainting A

    sigma = 0.5          # noise level (scalar, as in forward(x, sigma))
    lambda_ = 1.0        # DiffPIR lambda_
    sigma_s = 0.05       # operator measurement-noise std

    out = condition_denoiser_forward(x, w_mat, y, mask, sigma, lambda_, sigma_s)
    out = jax.block_until_ready(out)

    ref = reference_forward(x, w_mat, y, mask, sigma, lambda_, sigma_s)
    assert out.shape == (B, C, H, W)
    # bf16 matmul + approx reciprocal -> loosened (but still tight) tolerance
    assert jnp.max(jnp.abs(out - ref)) < 1e-2, "kernel does not match reference"

    print("KERNEL_OK")
</pallas_src>

<mosaic_0001>
module attributes {stable_mosaic.version = 11 : i64} {
  func.func @condition_denoiser_kernel(%arg0: i32, %arg1: i32, %arg2: memref<3xf32, #tpu.memory_space<smem>>, %arg3: memref<2x1024xbf16, #tpu.memory_space<vmem>>, %arg4: memref<1024x1024xbf16, #tpu.memory_space<vmem>>, %arg5: memref<2x1024xf32, #tpu.memory_space<vmem>>, %arg6: memref<2x1024xf32, #tpu.memory_space<vmem>>, %arg7: memref<2x1024xf32, #tpu.memory_space<vmem>>, %arg8: memref<2x1024xf32, #tpu.memory_space<vmem>>) attributes {dimension_semantics = [#tpu.dimension_semantics<parallel>, #tpu.dimension_semantics<arbitrary>], iteration_bounds = array<i64: 1, 1>, scalar_prefetch = 1 : i64, scratch_operands = 1 : i64, tpu.core_type = #tpu.core_type<tc>, window_params = [{transform_indices = @transform_0, window_bounds = array<i64: 2, 1024>}, {transform_indices = @transform_1, window_bounds = array<i64: 1024, 1024>}, {transform_indices = @transform_2, window_bounds = array<i64: 2, 1024>}, {transform_indices = @transform_3, window_bounds = array<i64: 2, 1024>}, {transform_indices = @transform_4, window_bounds = array<i64: 2, 1024>}]} {
    %c0_i32 = arith.constant 0 : i32
    %0 = arith.cmpi eq, %arg1, %c0_i32 : i32
    %1 = arith.extui %0 : i1 to i32
    %c0_i32_0 = arith.constant 0 : i32
    %2 = arith.cmpi ne, %1, %c0_i32_0 : i32
    scf.if %2 {
      %cst_10 = arith.constant 0.000000e+00 : f32
      %12 = vector.broadcast %cst_10 : f32 to vector<2x1024xf32>
      %c0_11 = arith.constant 0 : index
      %c0_12 = arith.constant 0 : index
      %13 = vector.load %arg8[%c0_11, %c0_12] : memref<2x1024xf32, #tpu.memory_space<vmem>>, vector<2x1024xf32>
      tpu.vector_store %arg8[%c0_11, %c0_12], %12 {strides = array<i32>} : memref<2x1024xf32, #tpu.memory_space<vmem>>, vector<2x1024xf32>,
    } else {
    }
    %c0 = arith.constant 0 : index
    %c0_1 = arith.constant 0 : index
    %3 = vector.load %arg8[%c0, %c0_1] : memref<2x1024xf32, #tpu.memory_space<vmem>>, vector<2x1024xf32>
    %c0_2 = arith.constant 0 : index
    %c0_3 = arith.constant 0 : index
    %4 = vector.load %arg3[%c0_2, %c0_3] : memref<2x1024xbf16, #tpu.memory_space<vmem>>, vector<2x1024xbf16>
    %c0_4 = arith.constant 0 : index
    %c0_5 = arith.constant 0 : index
    %5 = vector.load %arg4[%c0_4, %c0_5] : memref<1024x1024xbf16, #tpu.memory_space<vmem>>, vector<1024x1024xbf16>
    %cst = arith.constant dense<0.000000e+00> : vector<2x1024xf32>
    %6 = tpu.matmul %4, %5, %cst {dimension_numbers = #tpu.dot_dimension_numbers<[1], [0], [0], [1], [0, 0, 1, 1], [], []>} : vector<2x1024xbf16>, vector<1024x1024xbf16>, vector<2x1024xf32> -> vector<2x1024xf32>
    %7 = arith.addf %3, %6 : vector<2x1024xf32>
    %c0_6 = arith.constant 0 : index
    %c0_7 = arith.constant 0 : index
    %8 = vector.load %arg8[%c0_6, %c0_7] : memref<2x1024xf32, #tpu.memory_space<vmem>>, vector<2x1024xf32>
    tpu.vector_store %arg8[%c0_6, %c0_7], %7 {strides = array<i32>} : memref<2x1024xf32, #tpu.memory_space<vmem>>, vector<2x1024xf32>,
    %c0_i32_8 = arith.constant 0 : i32
    %9 = arith.cmpi eq, %arg1, %c0_i32_8 : i32
    %10 = arith.extui %9 : i1 to i32
    %c0_i32_9 = arith.constant 0 : i32
    %11 = arith.cmpi ne, %10, %c0_i32_9 : i32
    scf.if %11 {
      %c0_10 = arith.constant 0 : index
      %12 = memref.load %arg2[%c0_10] : memref<3xf32, #tpu.memory_space<smem>>
      %c1 = arith.constant 1 : index
      %13 = memref.load %arg2[%c1] : memref<3xf32, #tpu.memory_space<smem>>
      %c2 = arith.constant 2 : index
      %14 = memref.load %arg2[%c2] : memref<3xf32, #tpu.memory_space<smem>>
      %15 = arith.mulf %12, %12 : f32
      %16 = arith.divf %15, %13 : f32
      %c0_11 = arith.constant 0 : index
      %c0_12 = arith.constant 0 : index
      %17 = vector.load %arg8[%c0_11, %c0_12] : memref<2x1024xf32, #tpu.memory_space<vmem>>, vector<2x1024xf32>
      %c0_13 = arith.constant 0 : index
      %c0_14 = arith.constant 0 : index
      %18 = vector.load %arg6[%c0_13, %c0_14] : memref<2x1024xf32, #tpu.memory_space<vmem>>, vector<2x1024xf32>
      %19 = arith.mulf %18, %18 : vector<2x1024xf32>
      %20 = vector.broadcast %16 : f32 to vector<2x1024xf32>
      %21 = arith.mulf %19, %20 : vector<2x1024xf32>
      %22 = arith.mulf %14, %14 : f32
      %23 = vector.broadcast %22 : f32 to vector<2x1024xf32>
      %24 = arith.addf %21, %23 : vector<2x1024xf32>
      %25 = vector.broadcast %16 : f32 to vector<2x1024xf32>
      %26 = arith.mulf %18, %25 : vector<2x1024xf32>
      %27 = tpu.reciprocal %24 {approx = true} : vector<2x1024xf32> -> vector<2x1024xf32>
      %28 = arith.mulf %26, %27 : vector<2x1024xf32>
      %29 = arith.mulf %28, %18 : vector<2x1024xf32>
      %cst_15 = arith.constant 1.000000e+00 : f32
      %30 = vector.broadcast %cst_15 : f32 to vector<2x1024xf32>
      %31 = arith.subf %30, %29 : vector<2x1024xf32>
      %32 = arith.mulf %17, %31 : vector<2x1024xf32>
      %c0_16 = arith.constant 0 : index
      %c0_17 = arith.constant 0 : index
      %33 = vector.load %arg5[%c0_16, %c0_17] : memref<2x1024xf32, #tpu.memory_space<vmem>>, vector<2x1024xf32>
      %34 = arith.mulf %28, %33 : vector<2x1024xf32>
      %35 = arith.addf %32, %34 : vector<2x1024xf32>
      %cst_18 = arith.constant -1.000000e+00 : f32
      %cst_19 = arith.constant 1.000000e+00 : f32
      %36 = vector.broadcast %cst_18 : f32 to vector<2x1024xf32>
      %37 = arith.maximumf %36, %35 : vector<2x1024xf32>
      %38 = vector.broadcast %cst_19 : f32 to vector<2x1024xf32>
      %39 = arith.minimumf %38, %37 : vector<2x1024xf32>
      %c0_20 = arith.constant 0 : index
      %c0_21 = arith.constant 0 : index
      %40 = vector.load %arg7[%c0_20, %c0_21] : memref<2x1024xf32, #tpu.memory_space<vmem>>, vector<2x1024xf32>
      tpu.vector_store %arg7[%c0_20, %c0_21], %39 {strides = array<i32>} : memref<2x1024xf32, #tpu.memory_space<vmem>>, vector<2x1024xf32>,
    } else {
    }
    return
  }
  func.func @transform_0(%arg0: i32, %arg1: i32, %arg2: memref<3xf32, #tpu.memory_space<smem>>) -> (i32, i32) {
    %c0_i32 = arith.constant 0 : i32
    %c0_i32_0 = arith.constant 0 : i32
    return %c0_i32, %arg1 : i32, i32
  }
  func.func @transform_1(%arg0: i32, %arg1: i32, %arg2: memref<3xf32, #tpu.memory_space<smem>>) -> (i32, i32) {
    %c0_i32 = arith.constant 0 : i32
    return %arg1, %arg0 : i32, i32
  }
  func.func @transform_2(%arg0: i32, %arg1: i32, %arg2: memref<3xf32, #tpu.memory_space<smem>>) -> (i32, i32) {
    %c0_i32 = arith.constant 0 : i32
    %c0_i32_0 = arith.constant 0 : i32
    return %c0_i32, %arg0 : i32, i32
  }
  func.func @transform_3(%arg0: i32, %arg1: i32, %arg2: memref<3xf32, #tpu.memory_space<smem>>) -> (i32, i32) {
    %c0_i32 = arith.constant 0 : i32
    %c0_i32_0 = arith.constant 0 : i32
    return %c0_i32, %arg0 : i32, i32
  }
  func.func @transform_4(%arg0: i32, %arg1: i32, %arg2: memref<3xf32, #tpu.memory_space<smem>>) -> (i32, i32) {
    %c0_i32 = arith.constant 0 : i32
    %c0_i32_0 = arith.constant 0 : i32
    return %c0_i32, %arg0 : i32, i32
  }
}

</mosaic_0001>

<bundles_post_ra>
// kernel: tpu_custom_call.1
= control target key start
LH: loop header
LB: loop body
LE: loop exit
PB: predicated region body
PF: predicated region fallthrough
CT: control target
= control target key end

     0   :  { %s4923_s0 = inlined_call_operand.hbm [shape: f32[3], index: 0, kind: input, shape index: {}]   ;;  %s4924_s1 = inlined_call_operand.hbm [shape: bf16[2,1024], index: 1, kind: input, shape index: {}]   ;;  %s4925_s2 = inlined_call_operand.hbm [shape: bf16[1024,1024], index: 2, kind: input, shape index: {}]   ;;  %s4926_s3 = inlined_call_operand.hbm [shape: f32[2,1024], index: 3, kind: input, shape index: {}]   ;;  %s4927_s4 = inlined_call_operand.hbm [shape: f32[2,1024], index: 4, kind: input, shape index: {}]   ;;  %s4928_s5 = inlined_call_operand.hbm [shape: f32[2,1024], index: 5, kind: output, shape index: {}]  }
   0x1   :  { %s4564_s20 = scalar_lea.hbm %s4923_s0, 16 }
   0x2   :  { %p4565_p0 = scmp.ne.s32.totalorder %s4923_s0, %s4564_s20  ;;  %p4568_p1 = scmp.lt.u32.totalorder %s4564_s20, %s4923_s0 }
   0x4   :  { %p4570_p2 = pnand %p4568_p1, %p4565_p0 }
   0x6   :  { %4573 = shalt.err (!%p4570_p2)  }
   0x7   :  { %s4694_s25 = smov [#allocation4]  }
   0x8   :  { %11 = dma.hbm_to_smem %s4923_s0, 16, %s4694_s25, [#allocation3] }
   0x9   :  { %4684 = dma.done.wait [#allocation3], 16 }
   0xa   :  { %4685 = vsyncadd [#allocation3], 4294967280 }
   0xb   :  { %13 = sfence }
   0xc   :  { %14 = vsyncpa [#allocation6], 0 }
   0xd   :  { %15 = vsyncpa [#allocation9], 0 }
   0xe   :  { %16 = vsyncpa [#allocation12], 0 }
   0xf   :  { %17 = vsyncpa [#allocation7], 0  ;;  %s4695_s28 = smov [#allocation8]   ;;  %s4574_s7 = scalar_lea.hbm %s4925_s2, 65536 }
  0x10   :  { %s33_s29 = sshll.u32 %s4695_s28, 4  ;;  %p4575_p3 = scmp.ne.s32.totalorder %s4925_s2, %s4574_s7  ;;  %s34_s29 = int_to_ptr.vmem [resolvable:$true] %s33_s29 }
  0x11   :  { %p4578_p4 = scmp.lt.u32.totalorder %s4574_s7, %s4925_s2 }
  0x13   :  { %p4580_p5 = pnand %p4578_p4, %p4575_p3 }
  0x15   :  { %4583 = shalt.err (!%p4580_p5)
}
  0x16   :  { %s4584_s11 = scalar_lea.vmem %s34_s29, 65536  ;;  %p4589_p7 = scmp.lt.s32.totalorder %s34_s29, %s34_s29 }
  0x17   :  { %p4585_p6 = scmp.ne.s32.totalorder %s34_s29, %s4584_s11  ;;  %p4590_p8 = scmp.lt.s32.totalorder %s4584_s11, %s4584_s11 }
  0x19   :  { %p4591_p9 = por %p4590_p8, %p4589_p7 }
  0x1b   :  { %p4592_p10 = pnand %p4591_p9, %p4585_p6 }
  0x1d   :  { %4595 = shalt.err (!%p4592_p10)
}
  0x1e   :  { %s4696_s12 = smov 512   ;;  %s4697_s13 = smov 32  }
  0x1f   :  { %39 = dma.hbm_to_vmem [thread:$0]  %s4925_s2, 65536, %s34_s29, [#allocation9], %s4696_s12, %s4696_s12, %s4697_s13  }
  0x20   :  { %s4698_s16 = smov [#allocation5]   ;;  %s4699_s18 = smov [#allocation10]  }
  0x21   :  { %s24_s17 = sshll.u32 %s4698_s16, 4  ;;  %s46_s19 = sshll.u32 %s4699_s18, 4  ;;  %s25_s17 = int_to_ptr.vmem [resolvable:$true] %s24_s17  ;;  %s47_s19 = int_to_ptr.vmem [resolvable:$true] %s46_s19 }
  0x22   :  { %s4596_s22 = scalar_lea.hbm %s4924_s1, 128 }
  0x23   :  { %p4597_p11 = scmp.ne.s32.totalorder %s4924_s1, %s4596_s22  ;;  %p4600_p12 = scmp.lt.u32.totalorder %s4596_s22, %s4924_s1 }
  0x25   :  { %p4602_p13 = pnand %p4600_p12, %p4597_p11 }
  0x27   :  { %4605 = shalt.err (!%p4602_p13)
}
  0x28   :  { %s4606_s2 = scalar_lea.vmem %s25_s17, 128  ;;  %p4611_p1 = scmp.lt.s32.totalorder %s25_s17, %s25_s17 }
  0x29   :  { %p4607_p0 = scmp.ne.s32.totalorder %s25_s17, %s4606_s2  ;;  %p4612_p2 = scmp.lt.s32.totalorder %s4606_s2, %s4606_s2 }
  0x2b   :  { %p4613_p3 = por %p4612_p2, %p4611_p1 }
  0x2d   :  { %p4614_p4 = pnand %p4613_p3, %p4607_p0 }
  0x2f   :  { %4617 = shalt.err (!%p4614_p4)
}
  0x30   :  { %27 = dma.hbm_to_vmem [thread:$0]  %s4924_s1, 128, %s25_s17, [#allocation6]  }
  0x31   :  { %s4618_s6 = scalar_lea.hbm %s4926_s3, 256 }
  0x32   :  { %p4619_p5 = scmp.ne.s32.totalorder %s4926_s3, %s4618_s6  ;;  %p4622_p6 = scmp.lt.u32.totalorder %s4618_s6, %s4926_s3 }
  0x34   :  { %p4624_p7 = pnand %p4622_p6, %p4619_p5 }
  0x36   :  { %4627 = shalt.err (!%p4624_p7)
}
  0x37   :  { %s4628_s0 = scalar_lea.vmem %s47_s19, 256  ;;  %p4633_p9 = scmp.lt.s32.totalorder %s47_s19, %s47_s19 }
  0x38   :  { %p4629_p8 = scmp.ne.s32.totalorder %s47_s19, %s4628_s0  ;;  %p4634_p10 = scmp.lt.s32.totalorder %s4628_s0, %s4628_s0 }
  0x3a   :  { %p4635_p11 = por %p4634_p10, %p4633_p9 }
  0x3c   :  { %p4636_p12 = pnand %p4635_p11, %p4629_p8 }
  0x3e   :  { %4639 = shalt.err (!%p4636_p12)
}
  0x3f   :  { %49 = dma.hbm_to_vmem [thread:$0]  %s4926_s3, 256, %s47_s19, [#allocation9]  }
  0x40   :  { %s4700_s12 = smov [#allocation11]   ;;  %s4640_s16 = scalar_lea.hbm %s4927_s4, 256 }
  0x41   :  { %s56_s13 = sshll.u32 %s4700_s12, 4  ;;  %p4641_p13 = scmp.ne.s32.totalorder %s4927_s4, %s4640_s16  ;;  %s57_s13 = int_to_ptr.vmem [resolvable:$true] %s56_s13 }
  0x42   :  { %p4644_p0 = scmp.lt.u32.totalorder %s4640_s16, %s4927_s4 }
  0x44   :  { %p4646_p1 = pnand %p4644_p0, %p4641_p13 }
  0x46   :  { %4649 = shalt.err (!%p4646_p1)
}
  0x47   :  { %s4650_s22 = scalar_lea.vmem %s57_s13, 256  ;;  %p4655_p3 = scmp.lt.s32.totalorder %s57_s13, %s57_s13 }
  0x48   :  { %p4651_p2 = scmp.ne.s32.totalorder %s57_s13, %s4650_s22  ;;  %p4656_p4 = scmp.lt.s32.totalorder %s4650_s22, %s4650_s22 }
  0x4a   :  { %p4657_p5 = por %p4656_p4, %p4655_p3 }
  0x4c   :  { %p4658_p6 = pnand %p4657_p5, %p4651_p2 }
  0x4e   :  { %4661 = shalt.err (!%p4658_p6)
}
  0x4f   :  { %59 = dma.hbm_to_vmem [thread:$0]  %s4927_s4, 256, %s57_s13, [#allocation12]  }
  0x50   :  { %4686 = dma.done.wait [#allocation6], 128  }
  0x51   :  { %4687 = vsyncadd [#allocation6], 4294967168 }
  0x52   :  { %4688 = dma.done.wait [#allocation9], 65792  }
  0x53   :  { %4689 = vsyncadd [#allocation9], 4294901504 }
  0x54   :  { %4690 = dma.done.wait [#allocation12], 256  }
  0x55   :  { %4691 = vsyncadd [#allocation12], 4294967040  ;;  %v81_v0 = vld [vmem:[#allocation8] sm:$0xff]  ;;  %v82_v2 = vld [vmem:[#allocation8 + $0x8] sm:$0xff]  ;;  %v4701_v32 = vmov 1966171168   ;;  %v598_v34 = vlaneseq }
  0x56   :  { %v85_v1 = vld [vmem:[#allocation8 + $0x20] sm:$0xff]  ;;  %v86_v4 = vld [vmem:[#allocation8 + $0x28] sm:$0xff]  ;;  %v596_v33 = vunpack.c.l.s4 %v4701_v32  ;;  %v4799_v59 = vld [vmem:[#allocation5] sm:$0xff]  ;;  %s4492_s4 = sld [smem:[#allocation4 + $0x1]]  ;;  %s4857_s23 = sld [smem:[#allocation4]] }
  0x57   :  { %v3981_v3 = vcombine.high %v81_v0, %v85_v1  ;;  %v3980_v5 = vcombine.low %v81_v0, %v85_v1  ;;  %v89_v6 = vld [vmem:[#allocation8 + $0x40] sm:$0xff]  ;;  %v3983_v8 = vcombine.high %v82_v2, %v86_v4  ;;  %v3982_v9 = vcombine.low %v82_v2, %v86_v4  ;;  %v90_v11 = vld [vmem:[#allocation8 + $0x48] sm:$0xff]  ;;  %s4860_s24 = sld [smem:[#allocation4 + $0x2]]  ;;  %s4703_s28 = smov [#allocation13]  }
  0x58   :  { %v93_v7 = vld [vmem:[#allocation8 + $0x60] sm:$0xff]  ;;  %v94_v12 = vld [vmem:[#allocation8 + $0x68] sm:$0xff]  ;;  %v597_v43 = vunpack.c.0.s8 %v596_v33  ;;  %v4794_v44 = vshrl.u32 %v598_v34, 7  ;;  %s3969_s29 = sshll.u32 %s4703_s28, 4  ;;  %s3970_s29 = int_to_ptr.vmem [resolvable:$true] %s3969_s29 }
  0x59   :  { %v3989_v10 = vcombine.high %v89_v6, %v93_v7  ;;  %v97_v13 = vld [vmem:[#allocation8 + $0x80] sm:$0xff]  ;;  %3211 = vmatprep.subr.bf16.mxu0 %v3981_v3  ;;  %v3991_v14 = vcombine.high %v90_v11, %v94_v12  ;;  %v98_v16 = vld [vmem:[#allocation8 + $0x88] sm:$0xff]  ;;  %3375 = vmatprep.subr.bf16.mxu1 %v3983_v8  ;;  %v3988_v18 = vcombine.low %v89_v6, %v93_v7  ;;  %s4662_s30 = scalar_lea.vmem %s3970_s29, 256  ;;  %p4667_p8 = scmp.lt.s32.totalorder %s3970_s29, %s3970_s29 }
  0x5a   :  { %v101_v15 = vld [vmem:[#allocation8 + $0xa0] sm:$0xff]  ;;  %v102_v17 = vld [vmem:[#allocation8 + $0xa8] sm:$0xff]  ;;  %3212 = vmatpush1.bf16.msra.mxu0 %v3980_v5  ;;  %3376 = vmatpush1.bf16.msra.mxu1 %v3982_v9  ;;  %v3990_v19 = vcombine.low %v90_v11, %v94_v12  ;;  %v4797_v53 = vsub.s32 %v597_v43, %v4794_v44  ;;  %p4663_p7 = scmp.ne.s32.totalorder %s3970_s29, %s4662_s30  ;;  %p4668_p9 = scmp.lt.s32.totalorder %s4662_s30, %s4662_s30 }
  0x5b   :  { %3213 = vmatprep.subr.bf16.mxu0 %v3989_v10  ;;  %v3997_v20 = vcombine.high %v97_v13, %v101_v15  ;;  %3377 = vmatprep.subr.bf16.mxu1 %v3991_v14  ;;  %v3999_v21 = vcombine.high %v98_v16, %v102_v17  ;;  %v105_v22 = vld [vmem:[#allocation8 + $0xc0] sm:$0xff]  ;;  %v106_v24 = vld [vmem:[#allocation8 + $0xc8] sm:$0xff]  ;;  %v3996_v26 = vcombine.low %v97_v13, %v101_v15 }
  0x5c   :  { %v109_v23 = vld [vmem:[#allocation8 + $0xe0] sm:$0xff]  ;;  %v110_v25 = vld [vmem:[#allocation8 + $0xe8] sm:$0xff]  ;;  %v3998_v27 = vcombine.low %v98_v16, %v102_v17  ;;  %v4803_v63 = vrot.slane %v4799_v59, %v4797_v53  ;;  %s3921_s25 = smul.f32 %s4857_s23, %s4857_s23  ;;  %p4669_p10 = por %p4668_p9, %p4667_p8 }
  0x5d   :  { %v4005_v28 = vcombine.high %v105_v22, %v109_v23  ;;  %v4007_v29 = vcombine.high %v106_v24, %v110_v25  ;;  %v113_v30 = vld [vmem:[#allocation8 + $0x100] sm:$0xff]  ;;  %v114_v35 = vld [vmem:[#allocation8 + $0x108] sm:$0xff]  ;;  %v4004_v37 = vcombine.low %v105_v22, %v109_v23  ;;  %v4006_v38 = vcombine.low %v106_v24, %v110_v25  ;;  %s3935_s27 = smul.f32 %s4860_s24, %s4860_s24 }
  0x5e   :  { %3214 = vmatpush1.bf16.msra.mxu0 %v3988_v18  ;;  %3378 = vmatpush1.bf16.msra.mxu1 %v3990_v19  ;;  %v117_v31 = vld [vmem:[#allocation8 + $0x120] sm:$0xff]  ;;  %v118_v36 = vld [vmem:[#allocation8 + $0x128] sm:$0xff]  ;;  %v609_v3 = vcombine.high %v4803_v63, %v4803_v63  ;;  %p4670_p11 = pnand %p4669_p10, %p4663_p7 }
  0x5f   :  { %3215 = vmatprep.subr.bf16.mxu0 %v3997_v20  ;;  %3379 = vmatprep.subr.bf16.mxu1 %v3999_v21  ;;  %v4013_v39 = vcombine.high %v113_v30, %v117_v31  ;;  %v4015_v40 = vcombine.high %v114_v35, %v118_v36  ;;  %v121_v41 = vld [vmem:[#allocation8 + $0x140] sm:$0xff]  ;;  %v122_v45 = vld [vmem:[#allocation8 + $0x148] sm:$0xff]  ;;  %v4012_v47 = vcombine.low %v113_v30, %v117_v31 }
  0x60   :  { %v125_v42 = vld [vmem:[#allocation8 + $0x160] sm:$0xff]  ;;  %v126_v46 = vld [vmem:[#allocation8 + $0x168] sm:$0xff]  ;;  %v4014_v48 = vcombine.low %v114_v35, %v118_v36  ;;  %v4808_v9 = vrot.slane %v609_v3, %v4797_v53 }
  0x61   :  { %v4021_v49 = vcombine.high %v121_v41, %v125_v42  ;;  %v4023_v50 = vcombine.high %v122_v45, %v126_v46  ;;  %v129_v51 = vld [vmem:[#allocation8 + $0x180] sm:$0xff]  ;;  %v130_v54 = vld [vmem:[#allocation8 + $0x188] sm:$0xff]  ;;  %v4020_v56 = vcombine.low %v121_v41, %v125_v42  ;;  %v4022_v57 = vcombine.low %v122_v45, %v126_v46 }
  0x62   :  { %3216 = vmatpush1.bf16.msra.mxu0 %v3996_v26  ;;  %3380 = vmatpush1.bf16.msra.mxu1 %v3998_v27  ;;  %v133_v52 = vld [vmem:[#allocation8 + $0x1a0] sm:$0xff]  ;;  %v134_v55 = vld [vmem:[#allocation8 + $0x1a8] sm:$0xff] }
  0x63   :  { %3217 = vmatprep.subr.bf16.mxu0 %v4005_v28  ;;  %3381 = vmatprep.subr.bf16.mxu1 %v4007_v29  ;;  %v4029_v58 = vcombine.high %v129_v51, %v133_v52  ;;  %v4031_v60 = vcombine.high %v130_v54, %v134_v55  ;;  %v137_v61 = vld [vmem:[#allocation8 + $0x1c0] sm:$0xff]  ;;  %v138_v0 = vld [vmem:[#allocation8 + $0x1c8] sm:$0xff]  ;;  %v4028_v2 = vcombine.low %v129_v51, %v133_v52 }
  0x64   :  { %v141_v62 = vld [vmem:[#allocation8 + $0x1e0] sm:$0xff]  ;;  %v142_v1 = vld [vmem:[#allocation8 + $0x1e8] sm:$0xff]  ;;  %v4030_v4 = vcombine.low %v130_v54, %v134_v55  ;;  %3243 = vmatprep.mubr.bf16.mxu0 %v4808_v9  ;;  %3407 = vmatprep.mubr.bf16.mxu1 %v4808_v9 }
  0x65   :  { %v4037_v5 = vcombine.high %v137_v61, %v141_v62  ;;  %v4039_v6 = vcombine.high %v138_v0, %v142_v1  ;;  %v145_v7 = vld [vmem:[#allocation8 + $0x200] sm:$0xff]  ;;  %v146_v10 = vld [vmem:[#allocation8 + $0x208] sm:$0xff]  ;;  %v4036_v12 = vcombine.low %v137_v61, %v141_v62  ;;  %v4038_v13 = vcombine.low %v138_v0, %v142_v1 }
  0x66   :  { %3218 = vmatpush1.bf16.msra.mxu0 %v4004_v37  ;;  %3382 = vmatpush1.bf16.msra.mxu1 %v4006_v38  ;;  %v149_v8 = vld [vmem:[#allocation8 + $0x220] sm:$0xff]  ;;  %v150_v11 = vld [vmem:[#allocation8 + $0x228] sm:$0xff] }
  0x67   :  { %3219 = vmatprep.subr.bf16.mxu0 %v4013_v39  ;;  %3383 = vmatprep.subr.bf16.mxu1 %v4015_v40  ;;  %v4045_v14 = vcombine.high %v145_v7, %v149_v8  ;;  %v4047_v15 = vcombine.high %v146_v10, %v150_v11  ;;  %v153_v16 = vld [vmem:[#allocation8 + $0x240] sm:$0xff]  ;;  %v154_v18 = vld [vmem:[#allocation8 + $0x248] sm:$0xff]  ;;  %v4044_v20 = vcombine.low %v145_v7, %v149_v8 }
  0x68   :  { %v157_v17 = vld [vmem:[#allocation8 + $0x260] sm:$0xff]  ;;  %v158_v19 = vld [vmem:[#allocation8 + $0x268] sm:$0xff]  ;;  %v4046_v21 = vcombine.low %v146_v10, %v150_v11 }
  0x69   :  { %v4053_v22 = vcombine.high %v153_v16, %v157_v17  ;;  %v4055_v23 = vcombine.high %v154_v18, %v158_v19  ;;  %v161_v24 = vld [vmem:[#allocation8 + $0x280] sm:$0xff]  ;;  %v162_v26 = vld [vmem:[#allocation8 + $0x288] sm:$0xff]  ;;  %v4052_v28 = vcombine.low %v153_v16, %v157_v17  ;;  %v4054_v29 = vcombine.low %v154_v18, %v158_v19 }
  0x6a   :  { %3220 = vmatpush1.bf16.msra.mxu0 %v4012_v47  ;;  %3384 = vmatpush1.bf16.msra.mxu1 %v4014_v48  ;;  %v165_v25 = vld [vmem:[#allocation8 + $0x2a0] sm:$0xff]  ;;  %v166_v27 = vld [vmem:[#allocation8 + $0x2a8] sm:$0xff]  ;;  %v594_v18 = vcombine.high %v4799_v59, %v4799_v59 }
  0x6b   :  { %3221 = vmatprep.subr.bf16.mxu0 %v4021_v49  ;;  %3385 = vmatprep.subr.bf16.mxu1 %v4023_v50  ;;  %v4061_v30 = vcombine.high %v161_v24, %v165_v25  ;;  %v4063_v31 = vcombine.high %v162_v26, %v166_v27  ;;  %v169_v32 = vld [vmem:[#allocation8 + $0x2c0] sm:$0xff]  ;;  %v170_v34 = vld [vmem:[#allocation8 + $0x2c8] sm:$0xff]  ;;  %v4060_v36 = vcombine.low %v161_v24, %v165_v25 }
  0x6c   :  { %v173_v33 = vld [vmem:[#allocation8 + $0x2e0] sm:$0xff]  ;;  %v174_v35 = vld [vmem:[#allocation8 + $0x2e8] sm:$0xff]  ;;  %v4062_v37 = vcombine.low %v162_v26, %v166_v27  ;;  %v608_v24 = vrot.slane %v594_v18, %v4797_v53  ;;  %v4817_v25 = vrot.slane %v4803_v63, %v4797_v53 }
  0x6d   :  { %v4069_v38 = vcombine.high %v169_v32, %v173_v33  ;;  %v4071_v39 = vcombine.high %v170_v34, %v174_v35  ;;  %v177_v40 = vld [vmem:[#allocation8 + $0x300] sm:$0xff]  ;;  %v178_v42 = vld [vmem:[#allocation8 + $0x308] sm:$0xff]  ;;  %v4068_v45 = vcombine.low %v169_v32, %v173_v33  ;;  %v4070_v46 = vcombine.low %v170_v34, %v174_v35 }
  0x6e   :  { %3222 = vmatpush1.bf16.msra.mxu0 %v4020_v56  ;;  %3386 = vmatpush1.bf16.msra.mxu1 %v4022_v57  ;;  %v181_v41 = vld [vmem:[#allocation8 + $0x320] sm:$0xff]  ;;  %v182_v43 = vld [vmem:[#allocation8 + $0x328] sm:$0xff]  ;;  %v4821_v34 = vcombine.high %v4808_v9, %v4808_v9  ;;  %v4827_v35 = vrot.slane %v608_v24, %v4797_v53 }
  0x6f   :  { %3223 = vmatprep.subr.bf16.mxu0 %v4029_v58  ;;  %3387 = vmatprep.subr.bf16.mxu1 %v4031_v60  ;;  %v4077_v47 = vcombine.high %v177_v40, %v181_v41  ;;  %v4079_v48 = vcombine.high %v178_v42, %v182_v43  ;;  %v185_v49 = vld [vmem:[#allocation8 + $0x340] sm:$0xff]  ;;  %v186_v51 = vld [vmem:[#allocation8 + $0x348] sm:$0xff]  ;;  %v4076_v54 = vcombine.low %v177_v40, %v181_v41 }
  0x70   :  { %v189_v50 = vld [vmem:[#allocation8 + $0x360] sm:$0xff]  ;;  %v190_v52 = vld [vmem:[#allocation8 + $0x368] sm:$0xff]  ;;  %v4078_v55 = vcombine.low %v178_v42, %v182_v43 }
  0x71   :  { %v4085_v56 = vcombine.high %v185_v49, %v189_v50  ;;  %v4087_v57 = vcombine.high %v186_v51, %v190_v52  ;;  %v193_v58 = vld [vmem:[#allocation8 + $0x380] sm:$0xff]  ;;  %v194_v61 = vld [vmem:[#allocation8 + $0x388] sm:$0xff]  ;;  %v4084_v0 = vcombine.low %v185_v49, %v189_v50  ;;  %v4086_v1 = vcombine.low %v186_v51, %v190_v52 }
  0x72   :  { %3224 = vmatpush1.bf16.msra.mxu0 %v4028_v2  ;;  %3388 = vmatpush1.bf16.msra.mxu1 %v4030_v4  ;;  %v197_v60 = vld [vmem:[#allocation8 + $0x3a0] sm:$0xff]  ;;  %v198_v62 = vld [vmem:[#allocation8 + $0x3a8] sm:$0xff] }
  0x73   :  { %3225 = vmatprep.subr.bf16.mxu0 %v4037_v5  ;;  %3389 = vmatprep.subr.bf16.mxu1 %v4039_v6  ;;  %v4093_v2 = vcombine.high %v193_v58, %v197_v60  ;;  %v4095_v3 = vcombine.high %v194_v61, %v198_v62  ;;  %v201_v4 = vld [vmem:[#allocation8 + $0x3c0] sm:$0xff]  ;;  %v202_v6 = vld [vmem:[#allocation8 + $0x3c8] sm:$0xff]  ;;  %v4092_v8 = vcombine.low %v193_v58, %v197_v60 }
  0x74   :  { %v205_v5 = vld [vmem:[#allocation8 + $0x3e0] sm:$0xff]  ;;  %v206_v7 = vld [vmem:[#allocation8 + $0x3e8] sm:$0xff]  ;;  %v4094_v10 = vcombine.low %v194_v61, %v198_v62 }
  0x75   :  { %v4101_v11 = vcombine.high %v201_v4, %v205_v5  ;;  %v214_v16 = vld [vmem:[#allocation8 + $0x428] sm:$0xff]  ;;  %v4100_v17 = vcombine.low %v201_v4, %v205_v5  ;;  %v4102_v19 = vcombine.low %v202_v6, %v206_v7  ;;  %v225_v32 = vld [vmem:[#allocation8 + $0x480] sm:$0xff] }
  0x76   :  { %3226 = vmatpush1.bf16.msra.mxu0 %v4036_v12  ;;  %3390 = vmatpush1.bf16.msra.mxu1 %v4038_v13  ;;  %v4103_v12 = vcombine.high %v202_v6, %v206_v7  ;;  %v209_v13 = vld [vmem:[#allocation8 + $0x400] sm:$0xff]  ;;  %v218_v26 = vld [vmem:[#allocation8 + $0x448] sm:$0xff] }
  0x77   :  { %3227 = vmatprep.subr.bf16.mxu0 %v4045_v14  ;;  %3391 = vmatprep.subr.bf16.mxu1 %v4047_v15  ;;  %v213_v14 = vld [vmem:[#allocation8 + $0x420] sm:$0xff]  ;;  %v210_v15 = vld [vmem:[#allocation8 + $0x408] sm:$0xff] }
  0x78   :  { %v222_v27 = vld [vmem:[#allocation8 + $0x468] sm:$0xff]  ;;  %v4110_v59 = vcombine.low %v210_v15, %v214_v16  ;;  %v229_v33 = vld [vmem:[#allocation8 + $0x4a0] sm:$0xff] }
  0x79   :  { %v4125_v40 = vcombine.high %v225_v32, %v229_v33  ;;  %v233_v42 = vld [vmem:[#allocation8 + $0x4c0] sm:$0xff]  ;;  %v242_v52 = vld [vmem:[#allocation8 + $0x508] sm:$0xff] }
  0x7a   :  { %3228 = vmatpush1.bf16.msra.mxu0 %v4044_v20  ;;  %3392 = vmatpush1.bf16.msra.mxu1 %v4046_v21  ;;  %v4109_v20 = vcombine.high %v209_v13, %v213_v14  ;;  %v4111_v21 = vcombine.high %v210_v15, %v214_v16  ;;  %v237_v43 = vld [vmem:[#allocation8 + $0x4e0] sm:$0xff]  ;;  %v250_v62 = vld [vmem:[#allocation8 + $0x548] sm:$0xff] }
  0x7b   :  { %3229 = vmatprep.subr.bf16.mxu0 %v4053_v22  ;;  %3393 = vmatprep.subr.bf16.mxu1 %v4055_v23  ;;  %v217_v22 = vld [vmem:[#allocation8 + $0x440] sm:$0xff]  ;;  %v258_v7 = vld [vmem:[#allocation8 + $0x588] sm:$0xff] }
  0x7c   :  { %v221_v23 = vld [vmem:[#allocation8 + $0x460] sm:$0xff]  ;;  %v266_v16 = vld [vmem:[#allocation8 + $0x5c8] sm:$0xff] }
  0x7d   :  { %v241_v50 = vld [vmem:[#allocation8 + $0x500] sm:$0xff] }
  0x7e   :  { %3230 = vmatpush1.bf16.msra.mxu0 %v4052_v28  ;;  %3394 = vmatpush1.bf16.msra.mxu1 %v4054_v29  ;;  %v4108_v28 = vcombine.low %v209_v13, %v213_v14  ;;  %v610_v29 = vcombine.high %v608_v24, %v608_v24  ;;  %v245_v51 = vld [vmem:[#allocation8 + $0x520] sm:$0xff]  ;;  %v274_v24 = vld [vmem:[#allocation8 + $0x608] sm:$0xff] }
  0x7f   :  { %3231 = vmatprep.subr.bf16.mxu0 %v4061_v30  ;;  %3395 = vmatprep.subr.bf16.mxu1 %v4063_v31  ;;  %v4117_v30 = vcombine.high %v217_v22, %v221_v23  ;;  %v4119_v31 = vcombine.high %v218_v26, %v222_v27  ;;  %v249_v60 = vld [vmem:[#allocation8 + $0x540] sm:$0xff] }
  0x80   :  { %v4824_v63 = vrot.slane %v610_v29, %v4797_v53  ;;  %v234_v53 = vld [vmem:[#allocation8 + $0x4c8] sm:$0xff]  ;;  %v253_v61 = vld [vmem:[#allocation8 + $0x560] sm:$0xff] }
  0x81   :  { %v257_v5 = vld [vmem:[#allocation8 + $0x580] sm:$0xff] }
  0x82   :  { %3232 = vmatpush1.bf16.msra.mxu0 %v4060_v36  ;;  %3396 = vmatpush1.bf16.msra.mxu1 %v4062_v37  ;;  %v226_v36 = vld [vmem:[#allocation8 + $0x488] sm:$0xff]  ;;  %v261_v6 = vld [vmem:[#allocation8 + $0x5a0] sm:$0xff] }
  0x83   :  { %3233 = vmatprep.subr.bf16.mxu0 %v4069_v38  ;;  %3397 = vmatprep.subr.bf16.mxu1 %v4071_v39  ;;  %v230_v37 = vld [vmem:[#allocation8 + $0x4a8] sm:$0xff]  ;;  %v4116_v38 = vcombine.low %v217_v22, %v221_v23  ;;  %v4118_v39 = vcombine.low %v218_v26, %v222_v27  ;;  %v265_v14 = vld [vmem:[#allocation8 + $0x5c0] sm:$0xff]  ;;  %v4156_v18 = vcombine.low %v257_v5, %v261_v6 }
  0x84   :  { %v4127_v41 = vcombine.high %v226_v36, %v230_v37  ;;  %v269_v15 = vld [vmem:[#allocation8 + $0x5e0] sm:$0xff]  ;;  %v278_v26 = vld [vmem:[#allocation8 + $0x628] sm:$0xff] }
  0x85   :  { %v273_v22 = vld [vmem:[#allocation8 + $0x600] sm:$0xff]  ;;  %v4164_v27 = vcombine.low %v265_v14, %v269_v15 }
  0x86   :  { %3234 = vmatpush1.bf16.msra.mxu0 %v4068_v45  ;;  %3398 = vmatpush1.bf16.msra.mxu1 %v4070_v46  ;;  %v238_v45 = vld [vmem:[#allocation8 + $0x4e8] sm:$0xff]  ;;  %v4124_v46 = vcombine.low %v225_v32, %v229_v33  ;;  %v277_v23 = vld [vmem:[#allocation8 + $0x620] sm:$0xff] }
  0x87   :  { %3235 = vmatprep.subr.bf16.mxu0 %v4077_v47  ;;  %3399 = vmatprep.subr.bf16.mxu1 %v4079_v48  ;;  %v4126_v47 = vcombine.low %v226_v36, %v230_v37  ;;  %v4133_v48 = vcombine.high %v233_v42, %v237_v43  ;;  %v4135_v49 = vcombine.high %v234_v53, %v238_v45  ;;  %v282_v32 = vld [vmem:[#allocation8 + $0x648] sm:$0xff] }
  0x88   :  { %v4173_v29 = vcombine.high %v273_v22, %v277_v23  ;;  %v286_v33 = vld [vmem:[#allocation8 + $0x668] sm:$0xff]  ;;  %v4172_v36 = vcombine.low %v273_v22, %v277_v23  ;;  %v4174_v37 = vcombine.low %v274_v24, %v278_v26 }
  0x89   :  { %v330_v22 = vld [vmem:[#allocation8 + $0x7c8] sm:$0xff] }
  0x8a   :  { %3236 = vmatpush1.bf16.msra.mxu0 %v4076_v54  ;;  %3400 = vmatpush1.bf16.msra.mxu1 %v4078_v55  ;;  %v246_v54 = vld [vmem:[#allocation8 + $0x528] sm:$0xff]  ;;  %v4132_v55 = vcombine.low %v233_v42, %v237_v43 }
  0x8b   :  { %3237 = vmatprep.subr.bf16.mxu0 %v4085_v56  ;;  %3401 = vmatprep.subr.bf16.mxu1 %v4087_v57  ;;  %v4134_v56 = vcombine.low %v234_v53, %v238_v45  ;;  %v4141_v57 = vcombine.high %v241_v50, %v245_v51  ;;  %v4143_v58 = vcombine.high %v242_v52, %v246_v54  ;;  %v290_v42 = vld [vmem:[#allocation8 + $0x688] sm:$0xff] }
  0x8c   :  { %v294_v43 = vld [vmem:[#allocation8 + $0x6a8] sm:$0xff]  ;;  %v4182_v45 = vcombine.low %v282_v32, %v286_v33 }
  0x8d   :  { %v334_v23 = vld [vmem:[#allocation8 + $0x7e8] sm:$0xff] }
  0x8e   :  { %3238 = vmatpush1.bf16.msra.mxu0 %v4084_v0  ;;  %3402 = vmatpush1.bf16.msra.mxu1 %v4086_v1  ;;  %v254_v0 = vld [vmem:[#allocation8 + $0x568] sm:$0xff]  ;;  %v4140_v1 = vcombine.low %v241_v50, %v245_v51 }
  0x8f   :  { %3239 = vmatprep.subr.bf16.mxu0 %v4093_v2  ;;  %3403 = vmatprep.subr.bf16.mxu1 %v4095_v3  ;;  %v4142_v2 = vcombine.low %v242_v52, %v246_v54  ;;  %v4149_v3 = vcombine.high %v249_v60, %v253_v61  ;;  %v4151_v4 = vcombine.high %v250_v62, %v254_v0  ;;  %v298_v50 = vld [vmem:[#allocation8 + $0x6c8] sm:$0xff] }
  0x90   :  { %v302_v51 = vld [vmem:[#allocation8 + $0x6e8] sm:$0xff]  ;;  %v4190_v54 = vcombine.low %v290_v42, %v294_v43 }
  0x92   :  { %3240 = vmatpush1.bf16.msra.mxu0 %v4092_v8  ;;  %3404 = vmatpush1.bf16.msra.mxu1 %v4094_v10  ;;  %v262_v8 = vld [vmem:[#allocation8 + $0x5a8] sm:$0xff]  ;;  %v4148_v10 = vcombine.low %v249_v60, %v253_v61 }
  0x93   :  { %3241 = vmatprep.subr.bf16.mxu0 %v4101_v11  ;;  %3405 = vmatprep.subr.bf16.mxu1 %v4103_v12  ;;  %v4150_v11 = vcombine.low %v250_v62, %v254_v0  ;;  %v4157_v12 = vcombine.high %v257_v5, %v261_v6  ;;  %v4159_v13 = vcombine.high %v258_v7, %v262_v8  ;;  %v306_v60 = vld [vmem:[#allocation8 + $0x708] sm:$0xff] }
  0x94   :  { %v310_v61 = vld [vmem:[#allocation8 + $0x728] sm:$0xff]  ;;  %v4198_v0 = vcombine.low %v298_v50, %v302_v51 }
  0x95   :  { %v314_v5 = vld [vmem:[#allocation8 + $0x748] sm:$0xff] }
  0x96   :  { %3242 = vmatpush1.bf16.msra.mxu0 %v4100_v17  ;;  %3406 = vmatpush1.bf16.msra.mxu1 %v4102_v19  ;;  %v270_v17 = vld [vmem:[#allocation8 + $0x5e8] sm:$0xff]  ;;  %v4158_v19 = vcombine.low %v258_v7, %v262_v8  ;;  %v4206_v8 = vcombine.low %v306_v60, %v310_v61 }
  0x97   :  { %3252 = vmatprep.subr.bf16.mxu0 %v4109_v20  ;;  %3416 = vmatprep.subr.bf16.mxu1 %v4111_v21  ;;  %v4165_v20 = vcombine.high %v265_v14, %v269_v15  ;;  %v4167_v21 = vcombine.high %v266_v16, %v270_v17  ;;  %v318_v6 = vld [vmem:[#allocation8 + $0x768] sm:$0xff] }
  0x98   :  { %v322_v14 = vld [vmem:[#allocation8 + $0x788] sm:$0xff] }
  0x99   :  { %3244 = vmatmul.mubr.bf16.vlgmr.msra.gmra.mrb[0].mxu0 %v4817_v25  ;;  %3408 = vmatmul.mubr.bf16.vlgmr.msra.gmra.mrb[0].mxu1 %v4817_v25  ;;  %v326_v15 = vld [vmem:[#allocation8 + $0x7a8] sm:$0xff] }
  0x9a   :  { %3253 = vmatpush1.bf16.msra.mxu0 %v4108_v28  ;;  %3417 = vmatpush1.bf16.msra.mxu1 %v4110_v59  ;;  %v4166_v28 = vcombine.low %v266_v16, %v270_v17  ;;  %v4175_v59 = vcombine.high %v274_v24, %v278_v26  ;;  %v4214_v17 = vcombine.low %v314_v5, %v318_v6 }
  0x9b   :  { %3254 = vmatprep.subr.bf16.mxu0 %v4117_v30  ;;  %3418 = vmatprep.subr.bf16.mxu1 %v4119_v31  ;;  %v281_v30 = vld [vmem:[#allocation8 + $0x640] sm:$0xff]  ;;  %v4222_v26 = vcombine.low %v322_v14, %v326_v15 }
  0x9c   :  { %3284 = vmatprep.mubr.bf16.mxu0 %v4821_v34  ;;  %3448 = vmatprep.mubr.bf16.mxu1 %v4821_v34  ;;  %v285_v31 = vld [vmem:[#allocation8 + $0x660] sm:$0xff] }
  0x9d   :  { %v4180_v53 = vcombine.low %v281_v30, %v285_v31 }
  0x9e   :  { %3255 = vmatpush1.bf16.msra.mxu0 %v4116_v38  ;;  %3419 = vmatpush1.bf16.msra.mxu1 %v4118_v39  ;;  %v4181_v38 = vcombine.high %v281_v30, %v285_v31  ;;  %v4183_v39 = vcombine.high %v282_v32, %v286_v33  ;;  %v338_v30 = vld [vmem:[#allocation8 + $0x808] sm:$0xff]  ;;  %v4230_v33 = vcombine.low %v330_v22, %v334_v23 }
  0x9f   :  { %3256 = vmatprep.subr.bf16.mxu0 %v4125_v40  ;;  %3420 = vmatprep.subr.bf16.mxu1 %v4127_v41  ;;  %v289_v40 = vld [vmem:[#allocation8 + $0x680] sm:$0xff]  ;;  %v342_v31 = vld [vmem:[#allocation8 + $0x828] sm:$0xff] }
  0xa0   :  { %v293_v41 = vld [vmem:[#allocation8 + $0x6a0] sm:$0xff] }
  0xa1   :  { %v4188_v52 = vcombine.low %v289_v40, %v293_v41 }
  0xa2   :  { %3257 = vmatpush1.bf16.msra.mxu0 %v4124_v46  ;;  %3421 = vmatpush1.bf16.msra.mxu1 %v4126_v47  ;;  %v4189_v46 = vcombine.high %v289_v40, %v293_v41  ;;  %v4191_v47 = vcombine.high %v290_v42, %v294_v43  ;;  %v4835_v40 = vcombine.high %v4817_v25, %v4817_v25  ;;  %v346_v41 = vld [vmem:[#allocation8 + $0x848] sm:$0xff] }
  0xa3   :  { %3258 = vmatprep.subr.bf16.mxu0 %v4133_v48  ;;  %3422 = vmatprep.subr.bf16.mxu1 %v4135_v49  ;;  %v297_v48 = vld [vmem:[#allocation8 + $0x6c0] sm:$0xff]  ;;  %v350_v42 = vld [vmem:[#allocation8 + $0x868] sm:$0xff] }
  0xa4   :  { %v301_v49 = vld [vmem:[#allocation8 + $0x6e0] sm:$0xff] }
  0xa5   :  { %v4196_v62 = vcombine.low %v297_v48, %v301_v49 }
  0xa6   :  { %3259 = vmatpush1.bf16.msra.mxu0 %v4132_v55  ;;  %3423 = vmatpush1.bf16.msra.mxu1 %v4134_v56  ;;  %v4197_v55 = vcombine.high %v297_v48, %v301_v49  ;;  %v4199_v56 = vcombine.high %v298_v50, %v302_v51  ;;  %v357_v48 = vld [vmem:[#allocation8 + $0x8a0] sm:$0xff]  ;;  %v354_v49 = vld [vmem:[#allocation8 + $0x888] sm:$0xff] }
  0xa7   :  { %3260 = vmatprep.subr.bf16.mxu0 %v4141_v57  ;;  %3424 = vmatprep.subr.bf16.mxu1 %v4143_v58  ;;  %v305_v57 = vld [vmem:[#allocation8 + $0x700] sm:$0xff]  ;;  %v358_v50 = vld [vmem:[#allocation8 + $0x8a8] sm:$0xff] }
  0xa8   :  { %v309_v58 = vld [vmem:[#allocation8 + $0x720] sm:$0xff] }
  0xa9   :  { %v4204_v7 = vcombine.low %v305_v57, %v309_v58 }
  0xaa   :  { %3261 = vmatpush1.bf16.msra.mxu0 %v4140_v1  ;;  %3425 = vmatpush1.bf16.msra.mxu1 %v4142_v2  ;;  %v4205_v1 = vcombine.high %v305_v57, %v309_v58  ;;  %v4207_v2 = vcombine.high %v306_v60, %v310_v61  ;;  %v365_v57 = vld [vmem:[#allocation8 + $0x8e0] sm:$0xff]  ;;  %v362_v58 = vld [vmem:[#allocation8 + $0x8c8] sm:$0xff] }
  0xab   :  { %3262 = vmatprep.subr.bf16.mxu0 %v4149_v3  ;;  %3426 = vmatprep.subr.bf16.mxu1 %v4151_v4  ;;  %v313_v3 = vld [vmem:[#allocation8 + $0x740] sm:$0xff]  ;;  %v366_v60 = vld [vmem:[#allocation8 + $0x8e8] sm:$0xff] }
  0xac   :  { %v317_v4 = vld [vmem:[#allocation8 + $0x760] sm:$0xff] }
  0xad   :  { %v4212_v16 = vcombine.low %v313_v3, %v317_v4 }
  0xae   :  { %3263 = vmatpush1.bf16.msra.mxu0 %v4148_v10  ;;  %3427 = vmatpush1.bf16.msra.mxu1 %v4150_v11  ;;  %v4213_v10 = vcombine.high %v313_v3, %v317_v4  ;;  %v4215_v11 = vcombine.high %v314_v5, %v318_v6  ;;  %v373_v3 = vld [vmem:[#allocation8 + $0x920] sm:$0xff]  ;;  %v370_v4 = vld [vmem:[#allocation8 + $0x908] sm:$0xff] }
  0xaf   :  { %3264 = vmatprep.subr.bf16.mxu0 %v4157_v12  ;;  %3428 = vmatprep.subr.bf16.mxu1 %v4159_v13  ;;  %v321_v12 = vld [vmem:[#allocation8 + $0x780] sm:$0xff]  ;;  %v374_v5 = vld [vmem:[#allocation8 + $0x928] sm:$0xff] }
  0xb0   :  { %v325_v13 = vld [vmem:[#allocation8 + $0x7a0] sm:$0xff] }
  0xb1   :  { %v4220_v24 = vcombine.low %v321_v12, %v325_v13 }
  0xb2   :  { %3265 = vmatpush1.bf16.msra.mxu0 %v4156_v18  ;;  %3429 = vmatpush1.bf16.msra.mxu1 %v4158_v19  ;;  %v4221_v18 = vcombine.high %v321_v12, %v325_v13  ;;  %v4223_v19 = vcombine.high %v322_v14, %v326_v15  ;;  %v381_v12 = vld [vmem:[#allocation8 + $0x960] sm:$0xff]  ;;  %v378_v13 = vld [vmem:[#allocation8 + $0x948] sm:$0xff] }
  0xb3   :  { %3266 = vmatprep.subr.bf16.mxu0 %v4165_v20  ;;  %3430 = vmatprep.subr.bf16.mxu1 %v4167_v21  ;;  %v329_v20 = vld [vmem:[#allocation8 + $0x7c0] sm:$0xff]  ;;  %v382_v14 = vld [vmem:[#allocation8 + $0x968] sm:$0xff] }
  0xb4   :  { %v333_v21 = vld [vmem:[#allocation8 + $0x7e0] sm:$0xff] }
  0xb5   :  { %v4228_v32 = vcombine.low %v329_v20, %v333_v21 }
  0xb6   :  { %3267 = vmatpush1.bf16.msra.mxu0 %v4164_v27  ;;  %3431 = vmatpush1.bf16.msra.mxu1 %v4166_v28  ;;  %v4229_v27 = vcombine.high %v329_v20, %v333_v21  ;;  %v4231_v28 = vcombine.high %v330_v22, %v334_v23  ;;  %v389_v20 = vld [vmem:[#allocation8 + $0x9a0] sm:$0xff]  ;;  %v386_v21 = vld [vmem:[#allocation8 + $0x988] sm:$0xff] }
  0xb7   :  { %3268 = vmatprep.subr.bf16.mxu0 %v4173_v29  ;;  %3432 = vmatprep.subr.bf16.mxu1 %v4175_v59  ;;  %v337_v29 = vld [vmem:[#allocation8 + $0x800] sm:$0xff]  ;;  %v390_v22 = vld [vmem:[#allocation8 + $0x9a8] sm:$0xff] }
  0xb8   :  { %v341_v59 = vld [vmem:[#allocation8 + $0x820] sm:$0xff] }
  0xb9   :  { %v4236_v43 = vcombine.low %v337_v29, %v341_v59 }
  0xba   :  { %3269 = vmatpush1.bf16.msra.mxu0 %v4172_v36  ;;  %3433 = vmatpush1.bf16.msra.mxu1 %v4174_v37  ;;  %v4237_v36 = vcombine.high %v337_v29, %v341_v59  ;;  %v4239_v37 = vcombine.high %v338_v30, %v342_v31  ;;  %v397_v29 = vld [vmem:[#allocation8 + $0x9e0] sm:$0xff]  ;;  %v394_v59 = vld [vmem:[#allocation8 + $0x9c8] sm:$0xff] }
  0xbb   :  { %3270 = vmatprep.subr.bf16.mxu0 %v4181_v38  ;;  %3434 = vmatprep.subr.bf16.mxu1 %v4183_v39  ;;  %v345_v38 = vld [vmem:[#allocation8 + $0x840] sm:$0xff] }
  0xbc   :  { %v349_v39 = vld [vmem:[#allocation8 + $0x860] sm:$0xff] }
  0xbd   :  { %v4244_v51 = vcombine.low %v345_v38, %v349_v39 }
  0xbe   :  { %3271 = vmatpush1.bf16.msra.mxu0 %v4180_v53  ;;  %3435 = vmatpush1.bf16.msra.mxu1 %v4182_v45  ;;  %v4238_v53 = vcombine.low %v338_v30, %v342_v31  ;;  %v4245_v45 = vcombine.high %v345_v38, %v349_v39  ;;  %v398_v30 = vld [vmem:[#allocation8 + $0x9e8] sm:$0xff]  ;;  %v405_v38 = vld [vmem:[#allocation8 + $0xa20] sm:$0xff] }
  0xbf   :  { %3272 = vmatprep.subr.bf16.mxu0 %v4189_v46  ;;  %3436 = vmatprep.subr.bf16.mxu1 %v4191_v47  ;;  %v4247_v46 = vcombine.high %v346_v41, %v350_v42  ;;  %v353_v47 = vld [vmem:[#allocation8 + $0x880] sm:$0xff]  ;;  %v402_v39 = vld [vmem:[#allocation8 + $0xa08] sm:$0xff] }
  0xc0   :  { %v4252_v61 = vcombine.low %v353_v47, %v357_v48 }
  0xc2   :  { %3273 = vmatpush1.bf16.msra.mxu0 %v4188_v52  ;;  %3437 = vmatpush1.bf16.msra.mxu1 %v4190_v54  ;;  %v4246_v52 = vcombine.low %v346_v41, %v350_v42  ;;  %v4253_v54 = vcombine.high %v353_v47, %v357_v48  ;;  %v406_v41 = vld [vmem:[#allocation8 + $0xa28] sm:$0xff]  ;;  %v413_v47 = vld [vmem:[#allocation8 + $0xa60] sm:$0xff] }
  0xc3   :  { %3274 = vmatprep.subr.bf16.mxu0 %v4197_v55  ;;  %3438 = vmatprep.subr.bf16.mxu1 %v4199_v56  ;;  %v4255_v55 = vcombine.high %v354_v49, %v358_v50  ;;  %v361_v56 = vld [vmem:[#allocation8 + $0x8c0] sm:$0xff]  ;;  %v410_v48 = vld [vmem:[#allocation8 + $0xa48] sm:$0xff] }
  0xc4   :  { %v4260_v6 = vcombine.low %v361_v56, %v365_v57 }
  0xc6   :  { %3275 = vmatpush1.bf16.msra.mxu0 %v4196_v62  ;;  %3439 = vmatpush1.bf16.msra.mxu1 %v4198_v0  ;;  %v4254_v62 = vcombine.low %v354_v49, %v358_v50  ;;  %v4261_v0 = vcombine.high %v361_v56, %v365_v57  ;;  %v414_v49 = vld [vmem:[#allocation8 + $0xa68] sm:$0xff]  ;;  %v421_v56 = vld [vmem:[#allocation8 + $0xaa0] sm:$0xff] }
  0xc7   :  { %3276 = vmatprep.subr.bf16.mxu0 %v4205_v1  ;;  %3440 = vmatprep.subr.bf16.mxu1 %v4207_v2  ;;  %v4263_v1 = vcombine.high %v362_v58, %v366_v60  ;;  %v369_v2 = vld [vmem:[#allocation8 + $0x900] sm:$0xff]  ;;  %v418_v57 = vld [vmem:[#allocation8 + $0xa88] sm:$0xff] }
  0xc8   :  { %v4268_v15 = vcombine.low %v369_v2, %v373_v3 }
  0xca   :  { %3277 = vmatpush1.bf16.msra.mxu0 %v4204_v7  ;;  %3441 = vmatpush1.bf16.msra.mxu1 %v4206_v8  ;;  %v4262_v7 = vcombine.low %v362_v58, %v366_v60  ;;  %v4269_v8 = vcombine.high %v369_v2, %v373_v3  ;;  %v422_v58 = vld [vmem:[#allocation8 + $0xaa8] sm:$0xff]  ;;  %v429_v2 = vld [vmem:[#allocation8 + $0xae0] sm:$0xff] }
  0xcb   :  { %3278 = vmatprep.subr.bf16.mxu0 %v4213_v10  ;;  %3442 = vmatprep.subr.bf16.mxu1 %v4215_v11  ;;  %v4271_v10 = vcombine.high %v370_v4, %v374_v5  ;;  %v377_v11 = vld [vmem:[#allocation8 + $0x940] sm:$0xff]  ;;  %v426_v3 = vld [vmem:[#allocation8 + $0xac8] sm:$0xff] }
  0xcc   :  { %v4276_v23 = vcombine.low %v377_v11, %v381_v12 }
  0xce   :  { %3279 = vmatpush1.bf16.msra.mxu0 %v4212_v16  ;;  %3443 = vmatpush1.bf16.msra.mxu1 %v4214_v17  ;;  %v4270_v16 = vcombine.low %v370_v4, %v374_v5  ;;  %v4277_v17 = vcombine.high %v377_v11, %v381_v12  ;;  %v430_v4 = vld [vmem:[#allocation8 + $0xae8] sm:$0xff]  ;;  %v437_v11 = vld [vmem:[#allocation8 + $0xb20] sm:$0xff] }
  0xcf   :  { %3280 = vmatprep.subr.bf16.mxu0 %v4221_v18  ;;  %3444 = vmatprep.subr.bf16.mxu1 %v4223_v19  ;;  %v4279_v18 = vcombine.high %v378_v13, %v382_v14  ;;  %v385_v19 = vld [vmem:[#allocation8 + $0x980] sm:$0xff]  ;;  %v434_v12 = vld [vmem:[#allocation8 + $0xb08] sm:$0xff] }
  0xd0   :  { %v4284_v31 = vcombine.low %v385_v19, %v389_v20 }
  0xd2   :  { %3281 = vmatpush1.bf16.msra.mxu0 %v4220_v24  ;;  %3445 = vmatpush1.bf16.msra.mxu1 %v4222_v26  ;;  %v4278_v24 = vcombine.low %v378_v13, %v382_v14  ;;  %v4285_v26 = vcombine.high %v385_v19, %v389_v20  ;;  %v438_v13 = vld [vmem:[#allocation8 + $0xb28] sm:$0xff]  ;;  %v445_v19 = vld [vmem:[#allocation8 + $0xb60] sm:$0xff] }
  0xd3   :  { %3282 = vmatprep.subr.bf16.mxu0 %v4229_v27  ;;  %3446 = vmatprep.subr.bf16.mxu1 %v4231_v28  ;;  %v4287_v27 = vcombine.high %v386_v21, %v390_v22  ;;  %v393_v28 = vld [vmem:[#allocation8 + $0x9c0] sm:$0xff]  ;;  %v442_v20 = vld [vmem:[#allocation8 + $0xb48] sm:$0xff] }
  0xd4   :  { %v4292_v42 = vcombine.low %v393_v28, %v397_v29 }
  0xd6   :  { %3283 = vmatpush1.bf16.msra.mxu0 %v4228_v32  ;;  %3447 = vmatpush1.bf16.msra.mxu1 %v4230_v33  ;;  %v4286_v32 = vcombine.low %v386_v21, %v390_v22  ;;  %v4293_v33 = vcombine.high %v393_v28, %v397_v29  ;;  %v446_v21 = vld [vmem:[#allocation8 + $0xb68] sm:$0xff]  ;;  %v453_v28 = vld [vmem:[#allocation8 + $0xba0] sm:$0xff] }
  0xd7   :  { %3293 = vmatprep.subr.bf16.mxu0 %v4237_v36  ;;  %3457 = vmatprep.subr.bf16.mxu1 %v4239_v37  ;;  %v4295_v36 = vcombine.high %v394_v59, %v398_v30  ;;  %v401_v37 = vld [vmem:[#allocation8 + $0xa00] sm:$0xff]  ;;  %v450_v29 = vld [vmem:[#allocation8 + $0xb88] sm:$0xff] }
  0xd8   :  { %v4300_v50 = vcombine.low %v401_v37, %v405_v38 }
  0xd9   :  { %3285 = vmatmul.mubr.bf16.vlgmr.msra.gmra.mrb[0].mxu0 %v4835_v40  ;;  %3449 = vmatmul.mubr.bf16.vlgmr.msra.gmra.mrb[0].mxu1 %v4835_v40 }
  0xda   :  { %3294 = vmatpush1.bf16.msra.mxu0 %v4236_v43  ;;  %3458 = vmatpush1.bf16.msra.mxu1 %v4238_v53  ;;  %v4294_v43 = vcombine.low %v394_v59, %v398_v30  ;;  %v4301_v53 = vcombine.high %v401_v37, %v405_v38  ;;  %v454_v59 = vld [vmem:[#allocation8 + $0xba8] sm:$0xff]  ;;  %v461_v37 = vld [vmem:[#allocation8 + $0xbe0] sm:$0xff] }
  0xdb   :  { %3295 = vmatprep.subr.bf16.mxu0 %v4245_v45  ;;  %3459 = vmatprep.subr.bf16.mxu1 %v4247_v46  ;;  %v4303_v45 = vcombine.high %v402_v39, %v406_v41  ;;  %v409_v46 = vld [vmem:[#allocation8 + $0xa40] sm:$0xff]  ;;  %v458_v38 = vld [vmem:[#allocation8 + $0xbc8] sm:$0xff] }
  0xdc   :  { %3325 = vmatprep.mubr.bf16.mxu0 %v4824_v63  ;;  %3489 = vmatprep.mubr.bf16.mxu1 %v4824_v63  ;;  %v4308_v60 = vcombine.low %v409_v46, %v413_v47 }
  0xde   :  { %3296 = vmatpush1.bf16.msra.mxu0 %v4244_v51  ;;  %3460 = vmatpush1.bf16.msra.mxu1 %v4246_v52  ;;  %v4302_v51 = vcombine.low %v402_v39, %v406_v41  ;;  %v4309_v52 = vcombine.high %v409_v46, %v413_v47  ;;  %v462_v39 = vld [vmem:[#allocation8 + $0xbe8] sm:$0xff]  ;;  %v469_v46 = vld [vmem:[#allocation8 + $0xc20] sm:$0xff] }
  0xdf   :  { %3297 = vmatprep.subr.bf16.mxu0 %v4253_v54  ;;  %3461 = vmatprep.subr.bf16.mxu1 %v4255_v55  ;;  %v4311_v54 = vcombine.high %v410_v48, %v414_v49  ;;  %v417_v55 = vld [vmem:[#allocation8 + $0xa80] sm:$0xff]  ;;  %v466_v47 = vld [vmem:[#allocation8 + $0xc08] sm:$0xff] }
  0xe0   :  { %v4316_v5 = vcombine.low %v417_v55, %v421_v56 }
  0xe2   :  { %3298 = vmatpush1.bf16.msra.mxu0 %v4252_v61  ;;  %3462 = vmatpush1.bf16.msra.mxu1 %v4254_v62  ;;  %v4310_v61 = vcombine.low %v410_v48, %v414_v49  ;;  %v4317_v62 = vcombine.high %v417_v55, %v421_v56  ;;  %v470_v48 = vld [vmem:[#allocation8 + $0xc28] sm:$0xff]  ;;  %v477_v55 = vld [vmem:[#allocation8 + $0xc60] sm:$0xff] }
  0xe3   :  { %3299 = vmatprep.subr.bf16.mxu0 %v4261_v0  ;;  %3463 = vmatprep.subr.bf16.mxu1 %v4263_v1  ;;  %v4319_v0 = vcombine.high %v418_v57, %v422_v58  ;;  %v425_v1 = vld [vmem:[#allocation8 + $0xac0] sm:$0xff]  ;;  %v474_v56 = vld [vmem:[#allocation8 + $0xc48] sm:$0xff] }
  0xe4   :  { %v4324_v14 = vcombine.low %v425_v1, %v429_v2 }
  0xe6   :  { %3300 = vmatpush1.bf16.msra.mxu0 %v4260_v6  ;;  %3464 = vmatpush1.bf16.msra.mxu1 %v4262_v7  ;;  %v4318_v6 = vcombine.low %v418_v57, %v422_v58  ;;  %v4325_v7 = vcombine.high %v425_v1, %v429_v2  ;;  %v478_v57 = vld [vmem:[#allocation8 + $0xc68] sm:$0xff]  ;;  %v485_v1 = vld [vmem:[#allocation8 + $0xca0] sm:$0xff]  ;;  %v4843_v2 = vcombine.high %v4824_v63, %v4824_v63 }
  0xe7   :  { %3301 = vmatprep.subr.bf16.mxu0 %v4269_v8  ;;  %3465 = vmatprep.subr.bf16.mxu1 %v4271_v10  ;;  %v4327_v8 = vcombine.high %v426_v3, %v430_v4  ;;  %v433_v10 = vld [vmem:[#allocation8 + $0xb00] sm:$0xff] }
  0xe8   :  { %v4332_v22 = vcombine.low %v433_v10, %v437_v11 }
  0xea   :  { %3302 = vmatpush1.bf16.msra.mxu0 %v4268_v15  ;;  %3466 = vmatpush1.bf16.msra.mxu1 %v4270_v16  ;;  %v4326_v15 = vcombine.low %v426_v3, %v430_v4  ;;  %v4333_v16 = vcombine.high %v433_v10, %v437_v11  ;;  %v482_v3 = vld [vmem:[#allocation8 + $0xc88] sm:$0xff]  ;;  %v489_v10 = vld [vmem:[#allocation8 + $0xcc0] sm:$0xff] }
  0xeb   :  { %3303 = vmatprep.subr.bf16.mxu0 %v4277_v17  ;;  %3467 = vmatprep.subr.bf16.mxu1 %v4279_v18  ;;  %v4335_v17 = vcombine.high %v434_v12, %v438_v13  ;;  %v441_v18 = vld [vmem:[#allocation8 + $0xb40] sm:$0xff]  ;;  %v486_v4 = vld [vmem:[#allocation8 + $0xca8] sm:$0xff] }
  0xec   :  { %v4340_v30 = vcombine.low %v441_v18, %v445_v19  ;;  %v493_v11 = vld [vmem:[#allocation8 + $0xce0] sm:$0xff] }
  0xee   :  { %3304 = vmatpush1.bf16.msra.mxu0 %v4276_v23  ;;  %3468 = vmatpush1.bf16.msra.mxu1 %v4278_v24  ;;  %v4334_v23 = vcombine.low %v434_v12, %v438_v13  ;;  %v4341_v24 = vcombine.high %v441_v18, %v445_v19  ;;  %v490_v12 = vld [vmem:[#allocation8 + $0xcc8] sm:$0xff]  ;;  %v497_v18 = vld [vmem:[#allocation8 + $0xd00] sm:$0xff] }
  0xef   :  { %3305 = vmatprep.subr.bf16.mxu0 %v4285_v26  ;;  %3469 = vmatprep.subr.bf16.mxu1 %v4287_v27  ;;  %v4343_v26 = vcombine.high %v442_v20, %v446_v21  ;;  %v449_v27 = vld [vmem:[#allocation8 + $0xb80] sm:$0xff]  ;;  %v494_v13 = vld [vmem:[#allocation8 + $0xce8] sm:$0xff] }
  0xf0   :  { %v4348_v41 = vcombine.low %v449_v27, %v453_v28  ;;  %v501_v19 = vld [vmem:[#allocation8 + $0xd20] sm:$0xff] }
  0xf2   :  { %3306 = vmatpush1.bf16.msra.mxu0 %v4284_v31  ;;  %3470 = vmatpush1.bf16.msra.mxu1 %v4286_v32  ;;  %v4342_v31 = vcombine.low %v442_v20, %v446_v21  ;;  %v4349_v32 = vcombine.high %v449_v27, %v453_v28  ;;  %v498_v20 = vld [vmem:[#allocation8 + $0xd08] sm:$0xff]  ;;  %v505_v27 = vld [vmem:[#allocation8 + $0xd40] sm:$0xff] }
  0xf3   :  { %3307 = vmatprep.subr.bf16.mxu0 %v4293_v33  ;;  %3471 = vmatprep.subr.bf16.mxu1 %v4295_v36  ;;  %v4351_v33 = vcombine.high %v450_v29, %v454_v59  ;;  %v457_v36 = vld [vmem:[#allocation8 + $0xbc0] sm:$0xff]  ;;  %v502_v21 = vld [vmem:[#allocation8 + $0xd28] sm:$0xff] }
  0xf4   :  { %v4356_v49 = vcombine.low %v457_v36, %v461_v37  ;;  %v509_v28 = vld [vmem:[#allocation8 + $0xd60] sm:$0xff] }
  0xf6   :  { %3308 = vmatpush1.bf16.msra.mxu0 %v4292_v42  ;;  %3472 = vmatpush1.bf16.msra.mxu1 %v4294_v43  ;;  %v4350_v42 = vcombine.low %v450_v29, %v454_v59  ;;  %v4357_v43 = vcombine.high %v457_v36, %v461_v37  ;;  %v506_v29 = vld [vmem:[#allocation8 + $0xd48] sm:$0xff]  ;;  %v513_v36 = vld [vmem:[#allocation8 + $0xd80] sm:$0xff] }
  0xf7   :  { %3309 = vmatprep.subr.bf16.mxu0 %v4301_v53  ;;  %3473 = vmatprep.subr.bf16.mxu1 %v4303_v45  ;;  %v4359_v53 = vcombine.high %v458_v38, %v462_v39  ;;  %v465_v45 = vld [vmem:[#allocation8 + $0xc00] sm:$0xff]  ;;  %v510_v59 = vld [vmem:[#allocation8 + $0xd68] sm:$0xff] }
  0xf8   :  { %v4364_v58 = vcombine.low %v465_v45, %v469_v46  ;;  %v517_v37 = vld [vmem:[#allocation8 + $0xda0] sm:$0xff] }
  0xfa   :  { %3310 = vmatpush1.bf16.msra.mxu0 %v4300_v50  ;;  %3474 = vmatpush1.bf16.msra.mxu1 %v4302_v51  ;;  %v4358_v50 = vcombine.low %v458_v38, %v462_v39  ;;  %v4365_v51 = vcombine.high %v465_v45, %v469_v46  ;;  %v514_v38 = vld [vmem:[#allocation8 + $0xd88] sm:$0xff]  ;;  %v521_v45 = vld [vmem:[#allocation8 + $0xdc0] sm:$0xff] }
  0xfb   :  { %3311 = vmatprep.subr.bf16.mxu0 %v4309_v52  ;;  %3475 = vmatprep.subr.bf16.mxu1 %v4311_v54  ;;  %v4367_v52 = vcombine.high %v466_v47, %v470_v48  ;;  %v473_v54 = vld [vmem:[#allocation8 + $0xc40] sm:$0xff]  ;;  %v518_v39 = vld [vmem:[#allocation8 + $0xda8] sm:$0xff] }
  0xfc   :  { %v525_v46 = vld [vmem:[#allocation8 + $0xde0] sm:$0xff] }
  0xfe   :  { %3312 = vmatpush1.bf16.msra.mxu0 %v4308_v60  ;;  %3476 = vmatpush1.bf16.msra.mxu1 %v4310_v61  ;;  %v4366_v60 = vcombine.low %v466_v47, %v470_v48  ;;  %v4373_v61 = vcombine.high %v473_v54, %v477_v55  ;;  %v522_v47 = vld [vmem:[#allocation8 + $0xdc8] sm:$0xff] }
  0xff   :  { %3313 = vmatprep.subr.bf16.mxu0 %v4317_v62  ;;  %3477 = vmatprep.subr.bf16.mxu1 %v4319_v0  ;;  %v4375_v62 = vcombine.high %v474_v56, %v478_v57  ;;  %v481_v0 = vld [vmem:[#allocation8 + $0xc80] sm:$0xff]  ;;  %v526_v48 = vld [vmem:[#allocation8 + $0xde8] sm:$0xff] }
 0x102   :  { %3314 = vmatpush1.bf16.msra.mxu0 %v4316_v5  ;;  %3478 = vmatpush1.bf16.msra.mxu1 %v4318_v6  ;;  %v4372_v5 = vcombine.low %v473_v54, %v477_v55  ;;  %v4374_v6 = vcombine.low %v474_v56, %v478_v57  ;;  %v529_v54 = vld [vmem:[#allocation8 + $0xe00] sm:$0xff]  ;;  %v530_v56 = vld [vmem:[#allocation8 + $0xe08] sm:$0xff] }
 0x103   :  { %3315 = vmatprep.subr.bf16.mxu0 %v4325_v7  ;;  %3479 = vmatprep.subr.bf16.mxu1 %v4327_v8  ;;  %v4381_v7 = vcombine.high %v481_v0, %v485_v1  ;;  %v4383_v8 = vcombine.high %v482_v3, %v486_v4  ;;  %v533_v55 = vld [vmem:[#allocation8 + $0xe20] sm:$0xff]  ;;  %v534_v57 = vld [vmem:[#allocation8 + $0xe28] sm:$0xff] }
 0x106   :  { %3316 = vmatpush1.bf16.msra.mxu0 %v4324_v14  ;;  %3480 = vmatpush1.bf16.msra.mxu1 %v4326_v15  ;;  %v4380_v14 = vcombine.low %v481_v0, %v485_v1  ;;  %v4382_v15 = vcombine.low %v482_v3, %v486_v4  ;;  %v537_v0 = vld [vmem:[#allocation8 + $0xe40] sm:$0xff]  ;;  %v538_v3 = vld [vmem:[#allocation8 + $0xe48] sm:$0xff] }
 0x107   :  { %3317 = vmatprep.subr.bf16.mxu0 %v4333_v16  ;;  %3481 = vmatprep.subr.bf16.mxu1 %v4335_v17  ;;  %v4389_v16 = vcombine.high %v489_v10, %v493_v11  ;;  %v4391_v17 = vcombine.high %v490_v12, %v494_v13  ;;  %v541_v1 = vld [vmem:[#allocation8 + $0xe60] sm:$0xff]  ;;  %v542_v4 = vld [vmem:[#allocation8 + $0xe68] sm:$0xff] }
 0x10a   :  { %3318 = vmatpush1.bf16.msra.mxu0 %v4332_v22  ;;  %3482 = vmatpush1.bf16.msra.mxu1 %v4334_v23  ;;  %v4388_v22 = vcombine.low %v489_v10, %v493_v11  ;;  %v4390_v23 = vcombine.low %v490_v12, %v494_v13  ;;  %v545_v10 = vld [vmem:[#allocation8 + $0xe80] sm:$0xff]  ;;  %v546_v12 = vld [vmem:[#allocation8 + $0xe88] sm:$0xff] }
 0x10b   :  { %3319 = vmatprep.subr.bf16.mxu0 %v4341_v24  ;;  %3483 = vmatprep.subr.bf16.mxu1 %v4343_v26  ;;  %v4397_v24 = vcombine.high %v497_v18, %v501_v19  ;;  %v4399_v26 = vcombine.high %v498_v20, %v502_v21  ;;  %v549_v11 = vld [vmem:[#allocation8 + $0xea0] sm:$0xff]  ;;  %v550_v13 = vld [vmem:[#allocation8 + $0xea8] sm:$0xff] }
 0x10e   :  { %3320 = vmatpush1.bf16.msra.mxu0 %v4340_v30  ;;  %3484 = vmatpush1.bf16.msra.mxu1 %v4342_v31  ;;  %v4396_v30 = vcombine.low %v497_v18, %v501_v19  ;;  %v4398_v31 = vcombine.low %v498_v20, %v502_v21  ;;  %v553_v18 = vld [vmem:[#allocation8 + $0xec0] sm:$0xff]  ;;  %v554_v20 = vld [vmem:[#allocation8 + $0xec8] sm:$0xff] }
 0x10f   :  { %3321 = vmatprep.subr.bf16.mxu0 %v4349_v32  ;;  %3485 = vmatprep.subr.bf16.mxu1 %v4351_v33  ;;  %v4405_v32 = vcombine.high %v505_v27, %v509_v28  ;;  %v4407_v33 = vcombine.high %v506_v29, %v510_v59  ;;  %v557_v19 = vld [vmem:[#allocation8 + $0xee0] sm:$0xff]  ;;  %v558_v21 = vld [vmem:[#allocation8 + $0xee8] sm:$0xff] }
 0x112   :  { %3322 = vmatpush1.bf16.msra.mxu0 %v4348_v41  ;;  %3486 = vmatpush1.bf16.msra.mxu1 %v4350_v42  ;;  %v4404_v41 = vcombine.low %v505_v27, %v509_v28  ;;  %v4406_v42 = vcombine.low %v506_v29, %v510_v59  ;;  %v561_v27 = vld [vmem:[#allocation8 + $0xf00] sm:$0xff]  ;;  %v562_v29 = vld [vmem:[#allocation8 + $0xf08] sm:$0xff] }
 0x113   :  { %3323 = vmatprep.subr.bf16.mxu0 %v4357_v43  ;;  %3487 = vmatprep.subr.bf16.mxu1 %v4359_v53  ;;  %v4413_v43 = vcombine.high %v513_v36, %v517_v37  ;;  %v4415_v53 = vcombine.high %v514_v38, %v518_v39  ;;  %v565_v28 = vld [vmem:[#allocation8 + $0xf20] sm:$0xff]  ;;  %v566_v59 = vld [vmem:[#allocation8 + $0xf28] sm:$0xff] }
 0x116   :  { %3324 = vmatpush1.bf16.msra.mxu0 %v4356_v49  ;;  %3488 = vmatpush1.bf16.msra.mxu1 %v4358_v50  ;;  %v4412_v49 = vcombine.low %v513_v36, %v517_v37  ;;  %v4414_v50 = vcombine.low %v514_v38, %v518_v39  ;;  %v569_v36 = vld [vmem:[#allocation8 + $0xf40] sm:$0xff]  ;;  %v570_v38 = vld [vmem:[#allocation8 + $0xf48] sm:$0xff] }
 0x117   :  { %3334 = vmatprep.subr.bf16.mxu0 %v4365_v51  ;;  %3498 = vmatprep.subr.bf16.mxu1 %v4367_v52  ;;  %v4421_v51 = vcombine.high %v521_v45, %v525_v46  ;;  %v4423_v52 = vcombine.high %v522_v47, %v526_v48  ;;  %v573_v37 = vld [vmem:[#allocation8 + $0xf60] sm:$0xff]  ;;  %v574_v39 = vld [vmem:[#allocation8 + $0xf68] sm:$0xff] }
 0x119   :  { %3326 = vmatmul.mubr.bf16.vlgmr.msra.gmra.mrb[0].mxu0 %v4827_v35  ;;  %3490 = vmatmul.mubr.bf16.vlgmr.msra.gmra.mrb[0].mxu1 %v4827_v35 }
 0x11a   :  { %3335 = vmatpush1.bf16.msra.mxu0 %v4364_v58  ;;  %3499 = vmatpush1.bf16.msra.mxu1 %v4366_v60  ;;  %v4420_v58 = vcombine.low %v521_v45, %v525_v46  ;;  %v4422_v60 = vcombine.low %v522_v47, %v526_v48  ;;  %v577_v45 = vld [vmem:[#allocation8 + $0xf80] sm:$0xff]  ;;  %v578_v47 = vld [vmem:[#allocation8 + $0xf88] sm:$0xff] }
 0x11b   :  { %3336 = vmatprep.subr.bf16.mxu0 %v4373_v61  ;;  %3500 = vmatprep.subr.bf16.mxu1 %v4375_v62  ;;  %v4429_v61 = vcombine.high %v529_v54, %v533_v55  ;;  %v4431_v62 = vcombine.high %v530_v56, %v534_v57  ;;  %v581_v46 = vld [vmem:[#allocation8 + $0xfa0] sm:$0xff]  ;;  %v582_v48 = vld [vmem:[#allocation8 + $0xfa8] sm:$0xff] }
 0x11c   :  { %3366 = vmatprep.mubr.bf16.mxu0 %v4843_v2  ;;  %3530 = vmatprep.mubr.bf16.mxu1 %v4843_v2 }
 0x11e   :  { %3337 = vmatpush1.bf16.msra.mxu0 %v4372_v5  ;;  %3501 = vmatpush1.bf16.msra.mxu1 %v4374_v6  ;;  %v4428_v5 = vcombine.low %v529_v54, %v533_v55  ;;  %v4430_v6 = vcombine.low %v530_v56, %v534_v57  ;;  %v585_v54 = vld [vmem:[#allocation8 + $0xfc0] sm:$0xff]  ;;  %v586_v56 = vld [vmem:[#allocation8 + $0xfc8] sm:$0xff] }
 0x11f   :  { %3338 = vmatprep.subr.bf16.mxu0 %v4381_v7  ;;  %3502 = vmatprep.subr.bf16.mxu1 %v4383_v8  ;;  %v4437_v7 = vcombine.high %v537_v0, %v541_v1  ;;  %v4439_v8 = vcombine.high %v538_v3, %v542_v4  ;;  %v589_v55 = vld [vmem:[#allocation8 + $0xfe0] sm:$0xff]  ;;  %v590_v57 = vld [vmem:[#allocation8 + $0xfe8] sm:$0xff] }
 0x122   :  { %3339 = vmatpush1.bf16.msra.mxu0 %v4380_v14  ;;  %3503 = vmatpush1.bf16.msra.mxu1 %v4382_v15  ;;  %v4436_v14 = vcombine.low %v537_v0, %v541_v1  ;;  %v4438_v15 = vcombine.low %v538_v3, %v542_v4  ;;  %v83_v0 = vld [vmem:[#allocation8 + $0x10] sm:$0xff]  ;;  %v84_v3 = vld [vmem:[#allocation8 + $0x18] sm:$0xff] }
 0x123   :  { %3340 = vmatprep.subr.bf16.mxu0 %v4389_v16  ;;  %3504 = vmatprep.subr.bf16.mxu1 %v4391_v17  ;;  %v4445_v16 = vcombine.high %v545_v10, %v549_v11  ;;  %v4447_v17 = vcombine.high %v546_v12, %v550_v13  ;;  %v87_v1 = vld [vmem:[#allocation8 + $0x30] sm:$0xff]  ;;  %v88_v4 = vld [vmem:[#allocation8 + $0x38] sm:$0xff] }
 0x126   :  { %3341 = vmatpush1.bf16.msra.mxu0 %v4388_v22  ;;  %3505 = vmatpush1.bf16.msra.mxu1 %v4390_v23  ;;  %v4444_v22 = vcombine.low %v545_v10, %v549_v11  ;;  %v4446_v23 = vcombine.low %v546_v12, %v550_v13  ;;  %v91_v10 = vld [vmem:[#allocation8 + $0x50] sm:$0xff]  ;;  %v4851_v12 = vcombine.high %v4827_v35, %v4827_v35  ;;  %v92_v13 = vld [vmem:[#allocation8 + $0x58] sm:$0xff] }
 0x127   :  { %3342 = vmatprep.subr.bf16.mxu0 %v4397_v24  ;;  %3506 = vmatprep.subr.bf16.mxu1 %v4399_v26  ;;  %v4453_v24 = vcombine.high %v553_v18, %v557_v19  ;;  %v4455_v26 = vcombine.high %v554_v20, %v558_v21  ;;  %v95_v11 = vld [vmem:[#allocation8 + $0x70] sm:$0xff] }
 0x12a   :  { %3343 = vmatpush1.bf16.msra.mxu0 %v4396_v30  ;;  %3507 = vmatpush1.bf16.msra.mxu1 %v4398_v31  ;;  %v4452_v30 = vcombine.low %v553_v18, %v557_v19  ;;  %v4454_v31 = vcombine.low %v554_v20, %v558_v21  ;;  %v99_v19 = vld [vmem:[#allocation8 + $0x90] sm:$0xff]  ;;  %v100_v21 = vld [vmem:[#allocation8 + $0x98] sm:$0xff] }
 0x12b   :  { %3344 = vmatprep.subr.bf16.mxu0 %v4405_v32  ;;  %3508 = vmatprep.subr.bf16.mxu1 %v4407_v33  ;;  %v4461_v32 = vcombine.high %v561_v27, %v565_v28  ;;  %v4463_v33 = vcombine.high %v562_v29, %v566_v59  ;;  %v103_v20 = vld [vmem:[#allocation8 + $0xb0] sm:$0xff] }
 0x12e   :  { %3345 = vmatpush1.bf16.msra.mxu0 %v4404_v41  ;;  %3509 = vmatpush1.bf16.msra.mxu1 %v4406_v42  ;;  %v4460_v41 = vcombine.low %v561_v27, %v565_v28  ;;  %v4462_v42 = vcombine.low %v562_v29, %v566_v59  ;;  %v107_v28 = vld [vmem:[#allocation8 + $0xd0] sm:$0xff]  ;;  %v108_v59 = vld [vmem:[#allocation8 + $0xd8] sm:$0xff] }
 0x12f   :  { %3346 = vmatprep.subr.bf16.mxu0 %v4413_v43  ;;  %3510 = vmatprep.subr.bf16.mxu1 %v4415_v53  ;;  %v4469_v43 = vcombine.high %v569_v36, %v573_v37  ;;  %v4471_v53 = vcombine.high %v570_v38, %v574_v39  ;;  %v111_v29 = vld [vmem:[#allocation8 + $0xf0] sm:$0xff] }
 0x132   :  { %3347 = vmatpush1.bf16.msra.mxu0 %v4412_v49  ;;  %3511 = vmatpush1.bf16.msra.mxu1 %v4414_v50  ;;  %v4468_v49 = vcombine.low %v569_v36, %v573_v37  ;;  %v4470_v50 = vcombine.low %v570_v38, %v574_v39  ;;  %v3922_v36 = vstv %s4492_s4  ;;  %v115_v38 = vld [vmem:[#allocation8 + $0x110] sm:$0xff] }
 0x133   :  { %3348 = vmatprep.subr.bf16.mxu0 %v4421_v51  ;;  %3512 = vmatprep.subr.bf16.mxu1 %v4423_v52  ;;  %v4477_v51 = vcombine.high %v577_v45, %v581_v46  ;;  %v4479_v52 = vcombine.high %v578_v47, %v582_v48  ;;  %v119_v39 = vld [vmem:[#allocation8 + $0x130] sm:$0xff]  ;;  %4557 = vrcp.f32 %v3922_v36 }
 0x136   :  { %3349 = vmatpush1.bf16.msra.mxu0 %v4420_v58  ;;  %3513 = vmatpush1.bf16.msra.mxu1 %v4422_v60  ;;  %v4476_v58 = vcombine.low %v577_v45, %v581_v46  ;;  %v4478_v60 = vcombine.low %v578_v47, %v582_v48  ;;  %v123_v46 = vld [vmem:[#allocation8 + $0x150] sm:$0xff]  ;;  %v124_v48 = vld [vmem:[#allocation8 + $0x158] sm:$0xff] }
 0x137   :  { %3350 = vmatprep.subr.bf16.mxu0 %v4429_v61  ;;  %3514 = vmatprep.subr.bf16.mxu1 %v4431_v62  ;;  %v4485_v61 = vcombine.high %v585_v54, %v589_v55  ;;  %v4487_v62 = vcombine.high %v586_v56, %v590_v57  ;;  %v127_v47 = vld [vmem:[#allocation8 + $0x170] sm:$0xff] }
 0x13a   :  { %3351 = vmatpush1.bf16.msra.mxu0 %v4428_v5  ;;  %3515 = vmatpush1.bf16.msra.mxu1 %v4430_v6  ;;  %v4484_v5 = vcombine.low %v585_v54, %v589_v55  ;;  %v4486_v6 = vcombine.low %v586_v56, %v590_v57  ;;  %v131_v55 = vld [vmem:[#allocation8 + $0x190] sm:$0xff]  ;;  %v132_v57 = vld [vmem:[#allocation8 + $0x198] sm:$0xff] }
 0x13b   :  { %3352 = vmatprep.subr.bf16.mxu0 %v4437_v7  ;;  %3516 = vmatprep.subr.bf16.mxu1 %v4439_v8  ;;  %v3985_v7 = vcombine.high %v83_v0, %v87_v1  ;;  %v3987_v8 = vcombine.high %v84_v3, %v88_v4  ;;  %v135_v56 = vld [vmem:[#allocation8 + $0x1b0] sm:$0xff] }
 0x13e   :  { %3353 = vmatpush1.bf16.msra.mxu0 %v4436_v14  ;;  %3517 = vmatpush1.bf16.msra.mxu1 %v4438_v15  ;;  %v96_v14 = vld [vmem:[#allocation8 + $0x78] sm:$0xff]  ;;  %v3984_v15 = vcombine.low %v83_v0, %v87_v1  ;;  %v4033_v0 = vcombine.high %v131_v55, %v135_v56 }
 0x13f   :  { %3354 = vmatprep.subr.bf16.mxu0 %v4445_v16  ;;  %3518 = vmatprep.subr.bf16.mxu1 %v4447_v17  ;;  %v3986_v16 = vcombine.low %v84_v3, %v88_v4  ;;  %v3993_v17 = vcombine.high %v91_v10, %v95_v11  ;;  %v3995_v18 = vcombine.high %v92_v13, %v96_v14  ;;  %v139_v3 = vld [vmem:[#allocation8 + $0x1d0] sm:$0xff] }
 0x140   :  { %v143_v4 = vld [vmem:[#allocation8 + $0x1f0] sm:$0xff] }
 0x142   :  { %3355 = vmatpush1.bf16.msra.mxu0 %v4444_v22  ;;  %3519 = vmatpush1.bf16.msra.mxu1 %v4446_v23  ;;  %v104_v22 = vld [vmem:[#allocation8 + $0xb8] sm:$0xff]  ;;  %v3992_v23 = vcombine.low %v91_v10, %v95_v11  ;;  %v4041_v10 = vcombine.high %v139_v3, %v143_v4 }
 0x143   :  { %3356 = vmatprep.subr.bf16.mxu0 %v4453_v24  ;;  %3520 = vmatprep.subr.bf16.mxu1 %v4455_v26  ;;  %v3994_v24 = vcombine.low %v92_v13, %v96_v14  ;;  %v4001_v26 = vcombine.high %v99_v19, %v103_v20  ;;  %v4003_v27 = vcombine.high %v100_v21, %v104_v22  ;;  %v147_v13 = vld [vmem:[#allocation8 + $0x210] sm:$0xff] }
 0x144   :  { %v151_v14 = vld [vmem:[#allocation8 + $0x230] sm:$0xff] }
 0x146   :  { %3357 = vmatpush1.bf16.msra.mxu0 %v4452_v30  ;;  %3521 = vmatpush1.bf16.msra.mxu1 %v4454_v31  ;;  %v112_v30 = vld [vmem:[#allocation8 + $0xf8] sm:$0xff]  ;;  %v4000_v31 = vcombine.low %v99_v19, %v103_v20  ;;  %v4049_v19 = vcombine.high %v147_v13, %v151_v14 }
 0x147   :  { %3358 = vmatprep.subr.bf16.mxu0 %v4461_v32  ;;  %3522 = vmatprep.subr.bf16.mxu1 %v4463_v33  ;;  %v4002_v32 = vcombine.low %v100_v21, %v104_v22  ;;  %v4009_v33 = vcombine.high %v107_v28, %v111_v29  ;;  %v4011_v37 = vcombine.high %v108_v59, %v112_v30  ;;  %v155_v21 = vld [vmem:[#allocation8 + $0x250] sm:$0xff] }
 0x148   :  { %v159_v22 = vld [vmem:[#allocation8 + $0x270] sm:$0xff] }
 0x14a   :  { %3359 = vmatpush1.bf16.msra.mxu0 %v4460_v41  ;;  %3523 = vmatpush1.bf16.msra.mxu1 %v4462_v42  ;;  %v116_v41 = vld [vmem:[#allocation8 + $0x118] sm:$0xff] }
 0x14b   :  { %3360 = vmatprep.subr.bf16.mxu0 %v4469_v43  ;;  %3524 = vmatprep.subr.bf16.mxu1 %v4471_v53  ;;  %v120_v42 = vld [vmem:[#allocation8 + $0x138] sm:$0xff]  ;;  %v4008_v43 = vcombine.low %v107_v28, %v111_v29  ;;  %v4010_v53 = vcombine.low %v108_v59, %v112_v30  ;;  %v4057_v28 = vcombine.high %v155_v21, %v159_v22  ;;  %v163_v59 = vld [vmem:[#allocation8 + $0x290] sm:$0xff] }
 0x14c   :  { %v4019_v45 = vcombine.high %v116_v41, %v120_v42  ;;  %v167_v30 = vld [vmem:[#allocation8 + $0x2b0] sm:$0xff] }
 0x14e   :  { %3361 = vmatpush1.bf16.msra.mxu0 %v4468_v49  ;;  %3525 = vmatpush1.bf16.msra.mxu1 %v4470_v50  ;;  %v128_v49 = vld [vmem:[#allocation8 + $0x178] sm:$0xff]  ;;  %v4016_v50 = vcombine.low %v115_v38, %v119_v39 }
 0x14f   :  { %3362 = vmatprep.subr.bf16.mxu0 %v4477_v51  ;;  %3526 = vmatprep.subr.bf16.mxu1 %v4479_v52  ;;  %v4018_v51 = vcombine.low %v116_v41, %v120_v42  ;;  %v4025_v52 = vcombine.high %v123_v46, %v127_v47  ;;  %v4027_v54 = vcombine.high %v124_v48, %v128_v49  ;;  %v175_v41 = vld [vmem:[#allocation8 + $0x2f0] sm:$0xff]  ;;  %v172_v42 = vld [vmem:[#allocation8 + $0x2d8] sm:$0xff] }
 0x152   :  { %3363 = vmatpush1.bf16.msra.mxu0 %v4476_v58  ;;  %3527 = vmatpush1.bf16.msra.mxu1 %v4478_v60  ;;  %v136_v58 = vld [vmem:[#allocation8 + $0x1b8] sm:$0xff]  ;;  %v4558_v60 = vpop.eup %4557 }
 0x153   :  { %3364 = vmatprep.subr.bf16.mxu0 %v4485_v61  ;;  %3528 = vmatprep.subr.bf16.mxu1 %v4487_v62  ;;  %v4024_v61 = vcombine.low %v123_v46, %v127_v47  ;;  %v4026_v62 = vcombine.low %v124_v48, %v128_v49  ;;  %4544 = vpush %v4558_v60  ;;  %v179_v47 = vld [vmem:[#allocation8 + $0x310] sm:$0xff]  ;;  %v180_v49 = vld [vmem:[#allocation8 + $0x318] sm:$0xff] }
 0x154   :  { %v4035_v1 = vcombine.high %v132_v57, %v136_v58  ;;  %v183_v48 = vld [vmem:[#allocation8 + $0x330] sm:$0xff]  ;;  %v192_v60 = vld [vmem:[#allocation8 + $0x378] sm:$0xff] }
 0x156   :  { %3365 = vmatpush1.bf16.msra.mxu0 %v4484_v5  ;;  %3529 = vmatpush1.bf16.msra.mxu1 %v4486_v6  ;;  %v140_v5 = vld [vmem:[#allocation8 + $0x1d8] sm:$0xff] }
 0x157   :  { %3539 = vmatprep.subr.bf16.mxu0 %v3985_v7  ;;  %3703 = vmatprep.subr.bf16.mxu1 %v3987_v8  ;;  %v144_v6 = vld [vmem:[#allocation8 + $0x1f8] sm:$0xff]  ;;  %v4032_v7 = vcombine.low %v131_v55, %v135_v56  ;;  %v4034_v8 = vcombine.low %v132_v57, %v136_v58  ;;  %v187_v56 = vld [vmem:[#allocation8 + $0x350] sm:$0xff] }
 0x158   :  { %v4043_v11 = vcombine.high %v140_v5, %v144_v6  ;;  %v191_v57 = vld [vmem:[#allocation8 + $0x370] sm:$0xff]  ;;  %v188_v58 = vld [vmem:[#allocation8 + $0x358] sm:$0xff] }
 0x159   :  { %3367 = vmatmul.mubr.bf16.vlgmr.msra.gmra.mrb[0].mxu0 %v4851_v12  ;;  %3531 = vmatmul.mubr.bf16.vlgmr.msra.gmra.mrb[0].mxu1 %v4851_v12 }
 0x15a   :  { %3540 = vmatpush1.bf16.msra.mxu0 %v3984_v15  ;;  %3704 = vmatpush1.bf16.msra.mxu1 %v3986_v16  ;;  %v148_v15 = vld [vmem:[#allocation8 + $0x218] sm:$0xff] }
 0x15b   :  { %3541 = vmatprep.subr.bf16.mxu0 %v3993_v17  ;;  %3705 = vmatprep.subr.bf16.mxu1 %v3995_v18  ;;  %v152_v16 = vld [vmem:[#allocation8 + $0x238] sm:$0xff]  ;;  %v4040_v17 = vcombine.low %v139_v3, %v143_v4  ;;  %v4042_v18 = vcombine.low %v140_v5, %v144_v6  ;;  %v195_v3 = vld [vmem:[#allocation8 + $0x390] sm:$0xff] }
 0x15c   :  { %3571 = vmatprep.mubr.bf16.mxu0 %v4808_v9  ;;  %3735 = vmatprep.mubr.bf16.mxu1 %v4808_v9  ;;  %v4017_v9 = vcombine.high %v115_v38, %v119_v39  ;;  %v4051_v20 = vcombine.high %v148_v15, %v152_v16  ;;  %v171_v39 = vld [vmem:[#allocation8 + $0x2d0] sm:$0xff]  ;;  %v196_v5 = vld [vmem:[#allocation8 + $0x398] sm:$0xff] }
 0x15d   :  { %v199_v4 = vld [vmem:[#allocation8 + $0x3b0] sm:$0xff]  ;;  %v200_v6 = vld [vmem:[#allocation8 + $0x3b8] sm:$0xff] }
 0x15e   :  { %3542 = vmatpush1.bf16.msra.mxu0 %v3992_v23  ;;  %3706 = vmatpush1.bf16.msra.mxu1 %v3994_v24  ;;  %v156_v23 = vld [vmem:[#allocation8 + $0x258] sm:$0xff] }
 0x15f   :  { %3543 = vmatprep.subr.bf16.mxu0 %v4001_v26  ;;  %3707 = vmatprep.subr.bf16.mxu1 %v4003_v27  ;;  %v160_v24 = vld [vmem:[#allocation8 + $0x278] sm:$0xff]  ;;  %v4048_v26 = vcombine.low %v147_v13, %v151_v14  ;;  %v4050_v27 = vcombine.low %v148_v15, %v152_v16  ;;  %v203_v13 = vld [vmem:[#allocation8 + $0x3d0] sm:$0xff] }
 0x160   :  { %v4059_v29 = vcombine.high %v156_v23, %v160_v24  ;;  %v4058_v36 = vcombine.low %v156_v23, %v160_v24  ;;  %v207_v14 = vld [vmem:[#allocation8 + $0x3f0] sm:$0xff]  ;;  %v204_v15 = vld [vmem:[#allocation8 + $0x3d8] sm:$0xff] }
 0x161   :  { %v208_v16 = vld [vmem:[#allocation8 + $0x3f8] sm:$0xff] }
 0x162   :  { %3544 = vmatpush1.bf16.msra.mxu0 %v4000_v31  ;;  %3708 = vmatpush1.bf16.msra.mxu1 %v4002_v32  ;;  %v164_v31 = vld [vmem:[#allocation8 + $0x298] sm:$0xff] }
 0x163   :  { %3545 = vmatprep.subr.bf16.mxu0 %v4009_v33  ;;  %3709 = vmatprep.subr.bf16.mxu1 %v4011_v37  ;;  %v168_v32 = vld [vmem:[#allocation8 + $0x2b8] sm:$0xff]  ;;  %v4056_v33 = vcombine.low %v155_v21, %v159_v22  ;;  %v4065_v37 = vcombine.high %v163_v59, %v167_v30  ;;  %v211_v21 = vld [vmem:[#allocation8 + $0x410] sm:$0xff] }
 0x164   :  { %v4067_v38 = vcombine.high %v164_v31, %v168_v32  ;;  %v215_v22 = vld [vmem:[#allocation8 + $0x430] sm:$0xff]  ;;  %v212_v23 = vld [vmem:[#allocation8 + $0x418] sm:$0xff] }
 0x165   :  { %v216_v24 = vld [vmem:[#allocation8 + $0x438] sm:$0xff] }
 0x166   :  { %3546 = vmatpush1.bf16.msra.mxu0 %v4008_v43  ;;  %3710 = vmatpush1.bf16.msra.mxu1 %v4010_v53  ;;  %v176_v43 = vld [vmem:[#allocation8 + $0x2f8] sm:$0xff]  ;;  %v4064_v53 = vcombine.low %v163_v59, %v167_v30  ;;  %v219_v59 = vld [vmem:[#allocation8 + $0x450] sm:$0xff] }
 0x167   :  { %3547 = vmatprep.subr.bf16.mxu0 %v4017_v9  ;;  %3711 = vmatprep.subr.bf16.mxu1 %v4019_v45  ;;  %v4066_v9 = vcombine.low %v164_v31, %v168_v32  ;;  %v4073_v45 = vcombine.high %v171_v39, %v175_v41  ;;  %v4075_v46 = vcombine.high %v172_v42, %v176_v43  ;;  %v223_v30 = vld [vmem:[#allocation8 + $0x470] sm:$0xff]  ;;  %v220_v31 = vld [vmem:[#allocation8 + $0x458] sm:$0xff] }
 0x168   :  { %v224_v32 = vld [vmem:[#allocation8 + $0x478] sm:$0xff] }
 0x16a   :  { %3548 = vmatpush1.bf16.msra.mxu0 %v4016_v50  ;;  %3712 = vmatpush1.bf16.msra.mxu1 %v4018_v51  ;;  %v184_v50 = vld [vmem:[#allocation8 + $0x338] sm:$0xff]  ;;  %v4072_v51 = vcombine.low %v171_v39, %v175_v41  ;;  %v227_v39 = vld [vmem:[#allocation8 + $0x490] sm:$0xff] }
 0x16b   :  { %3549 = vmatprep.subr.bf16.mxu0 %v4025_v52  ;;  %3713 = vmatprep.subr.bf16.mxu1 %v4027_v54  ;;  %v4074_v52 = vcombine.low %v172_v42, %v176_v43  ;;  %v4081_v54 = vcombine.high %v179_v47, %v183_v48  ;;  %v4083_v55 = vcombine.high %v180_v49, %v184_v50  ;;  %v231_v41 = vld [vmem:[#allocation8 + $0x4b0] sm:$0xff]  ;;  %v228_v42 = vld [vmem:[#allocation8 + $0x498] sm:$0xff] }
 0x16c   :  { %v232_v43 = vld [vmem:[#allocation8 + $0x4b8] sm:$0xff] }
 0x16e   :  { %3550 = vmatpush1.bf16.msra.mxu0 %v4024_v61  ;;  %3714 = vmatpush1.bf16.msra.mxu1 %v4026_v62  ;;  %v4080_v61 = vcombine.low %v179_v47, %v183_v48  ;;  %v4082_v62 = vcombine.low %v180_v49, %v184_v50  ;;  %v4131_v47 = vcombine.high %v228_v42, %v232_v43  ;;  %v235_v48 = vld [vmem:[#allocation8 + $0x4d0] sm:$0xff]  ;;  %v236_v50 = vld [vmem:[#allocation8 + $0x4d8] sm:$0xff] }
 0x16f   :  { %3551 = vmatprep.subr.bf16.mxu0 %v4033_v0  ;;  %3715 = vmatprep.subr.bf16.mxu1 %v4035_v1  ;;  %v4089_v0 = vcombine.high %v187_v56, %v191_v57  ;;  %v4091_v1 = vcombine.high %v188_v58, %v192_v60  ;;  %v239_v49 = vld [vmem:[#allocation8 + $0x4f0] sm:$0xff] }
 0x172   :  { %3552 = vmatpush1.bf16.msra.mxu0 %v4032_v7  ;;  %3716 = vmatpush1.bf16.msra.mxu1 %v4034_v8  ;;  %v4088_v7 = vcombine.low %v187_v56, %v191_v57  ;;  %v4090_v8 = vcombine.low %v188_v58, %v192_v60  ;;  %v243_v58 = vld [vmem:[#allocation8 + $0x510] sm:$0xff] }
 0x173   :  { %3553 = vmatprep.subr.bf16.mxu0 %v4041_v10  ;;  %3717 = vmatprep.subr.bf16.mxu1 %v4043_v11  ;;  %v4097_v10 = vcombine.high %v195_v3, %v199_v4  ;;  %v4099_v11 = vcombine.high %v196_v5, %v200_v6  ;;  %v247_v60 = vld [vmem:[#allocation8 + $0x530] sm:$0xff] }
 0x176   :  { %3554 = vmatpush1.bf16.msra.mxu0 %v4040_v17  ;;  %3718 = vmatpush1.bf16.msra.mxu1 %v4042_v18  ;;  %v4096_v17 = vcombine.low %v195_v3, %v199_v4  ;;  %v4098_v18 = vcombine.low %v196_v5, %v200_v6  ;;  %v4145_v5 = vcombine.high %v243_v58, %v247_v60 }
 0x177   :  { %3555 = vmatprep.subr.bf16.mxu0 %v4049_v19  ;;  %3719 = vmatprep.subr.bf16.mxu1 %v4051_v20  ;;  %v4105_v19 = vcombine.high %v203_v13, %v207_v14  ;;  %v4107_v20 = vcombine.high %v204_v15, %v208_v16 }
 0x17a   :  { %3556 = vmatpush1.bf16.msra.mxu0 %v4048_v26  ;;  %3720 = vmatpush1.bf16.msra.mxu1 %v4050_v27  ;;  %v4104_v26 = vcombine.low %v203_v13, %v207_v14  ;;  %v4106_v27 = vcombine.low %v204_v15, %v208_v16  ;;  %v4144_v13 = vcombine.low %v243_v58, %v247_v60  ;;  %v296_v58 = vld [vmem:[#allocation8 + $0x6b8] sm:$0xff] }
 0x17b   :  { %3557 = vmatprep.subr.bf16.mxu0 %v4057_v28  ;;  %3721 = vmatprep.subr.bf16.mxu1 %v4059_v29  ;;  %v4113_v28 = vcombine.high %v211_v21, %v215_v22  ;;  %v4115_v29 = vcombine.high %v212_v23, %v216_v24 }
 0x17e   :  { %3558 = vmatpush1.bf16.msra.mxu0 %v4056_v33  ;;  %3722 = vmatpush1.bf16.msra.mxu1 %v4058_v36  ;;  %v4112_v33 = vcombine.low %v211_v21, %v215_v22  ;;  %v4114_v36 = vcombine.low %v212_v23, %v216_v24 }
 0x17f   :  { %3559 = vmatprep.subr.bf16.mxu0 %v4065_v37  ;;  %3723 = vmatprep.subr.bf16.mxu1 %v4067_v38  ;;  %v4121_v37 = vcombine.high %v219_v59, %v223_v30  ;;  %v4123_v38 = vcombine.high %v220_v31, %v224_v32 }
 0x182   :  { %3560 = vmatpush1.bf16.msra.mxu0 %v4064_v53  ;;  %3724 = vmatpush1.bf16.msra.mxu1 %v4066_v9  ;;  %v4120_v53 = vcombine.low %v219_v59, %v223_v30  ;;  %v4122_v9 = vcombine.low %v220_v31, %v224_v32  ;;  %v272_v59 = vld [vmem:[#allocation8 + $0x5f8] sm:$0xff] }
 0x183   :  { %3561 = vmatprep.subr.bf16.mxu0 %v4073_v45  ;;  %3725 = vmatprep.subr.bf16.mxu1 %v4075_v46  ;;  %v4129_v45 = vcombine.high %v227_v39, %v231_v41  ;;  %v4865_v46 = vld [vmem:[#allocation11 + $0x8] sm:$0xff] }
 0x184   :  { %s4545_s26 = spop %4544 }
 0x185   :  { %s3925_s2 = smul.f32 %s4545_s26, %s3921_s25 }
 0x186   :  { %3562 = vmatpush1.bf16.msra.mxu0 %v4072_v51  ;;  %3726 = vmatpush1.bf16.msra.mxu1 %v4074_v52  ;;  %v240_v51 = vld [vmem:[#allocation8 + $0x4f8] sm:$0xff]  ;;  %v4128_v52 = vcombine.low %v227_v39, %v231_v41 }
 0x187   :  { %3563 = vmatprep.subr.bf16.mxu0 %v4081_v54  ;;  %3727 = vmatprep.subr.bf16.mxu1 %v4083_v55  ;;  %v4130_v54 = vcombine.low %v228_v42, %v232_v43  ;;  %v4137_v55 = vcombine.high %v235_v48, %v239_v49  ;;  %v4871_v56 = vstv %s3925_s2  ;;  %v4139_v57 = vcombine.high %v236_v50, %v240_v51  ;;  %v276_v41 = vld [vmem:[#allocation8 + $0x618] sm:$0xff] }
 0x188   :  { %v4138_v4 = vcombine.low %v236_v50, %v240_v51  ;;  %v280_v42 = vld [vmem:[#allocation8 + $0x638] sm:$0xff] }
 0x189   :  { %v4178_v50 = vcombine.low %v276_v41, %v280_v42 }
 0x18a   :  { %3564 = vmatpush1.bf16.msra.mxu0 %v4080_v61  ;;  %3728 = vmatpush1.bf16.msra.mxu1 %v4082_v62  ;;  %v244_v62 = vld [vmem:[#allocation8 + $0x518] sm:$0xff] }
 0x18b   :  { %3565 = vmatprep.subr.bf16.mxu0 %v4089_v0  ;;  %3729 = vmatprep.subr.bf16.mxu1 %v4091_v1  ;;  %v248_v0 = vld [vmem:[#allocation8 + $0x538] sm:$0xff]  ;;  %v4136_v1 = vcombine.low %v235_v48, %v239_v49 }
 0x18c   :  { %v4147_v6 = vcombine.high %v244_v62, %v248_v0  ;;  %v4146_v14 = vcombine.low %v244_v62, %v248_v0  ;;  %v284_v48 = vld [vmem:[#allocation8 + $0x658] sm:$0xff] }
 0x18d   :  { %v288_v49 = vld [vmem:[#allocation8 + $0x678] sm:$0xff] }
 0x18e   :  { %3566 = vmatpush1.bf16.msra.mxu0 %v4088_v7  ;;  %3730 = vmatpush1.bf16.msra.mxu1 %v4090_v8  ;;  %v251_v7 = vld [vmem:[#allocation8 + $0x550] sm:$0xff] }
 0x18f   :  { %3567 = vmatprep.subr.bf16.mxu0 %v4097_v10  ;;  %3731 = vmatprep.subr.bf16.mxu1 %v4099_v11  ;;  %v255_v8 = vld [vmem:[#allocation8 + $0x570] sm:$0xff]  ;;  %v252_v10 = vld [vmem:[#allocation8 + $0x558] sm:$0xff] }
 0x190   :  { %v256_v11 = vld [vmem:[#allocation8 + $0x578] sm:$0xff]  ;;  %v4153_v15 = vcombine.high %v251_v7, %v255_v8  ;;  %v4152_v21 = vcombine.low %v251_v7, %v255_v8 }
 0x191   :  { %v4155_v16 = vcombine.high %v252_v10, %v256_v11  ;;  %v4154_v22 = vcombine.low %v252_v10, %v256_v11  ;;  %v307_v11 = vld [vmem:[#allocation8 + $0x710] sm:$0xff] }
 0x192   :  { %3568 = vmatpush1.bf16.msra.mxu0 %v4096_v17  ;;  %3732 = vmatpush1.bf16.msra.mxu1 %v4098_v18  ;;  %v259_v17 = vld [vmem:[#allocation8 + $0x590] sm:$0xff] }
 0x193   :  { %3569 = vmatprep.subr.bf16.mxu0 %v4105_v19  ;;  %3733 = vmatprep.subr.bf16.mxu1 %v4107_v20  ;;  %v263_v18 = vld [vmem:[#allocation8 + $0x5b0] sm:$0xff]  ;;  %v260_v19 = vld [vmem:[#allocation8 + $0x598] sm:$0xff] }
 0x194   :  { %v264_v20 = vld [vmem:[#allocation8 + $0x5b8] sm:$0xff]  ;;  %v4161_v23 = vcombine.high %v259_v17, %v263_v18  ;;  %v4160_v30 = vcombine.low %v259_v17, %v263_v18 }
 0x195   :  { %v4163_v24 = vcombine.high %v260_v19, %v264_v20  ;;  %v4162_v32 = vcombine.low %v260_v19, %v264_v20  ;;  %v315_v20 = vld [vmem:[#allocation8 + $0x750] sm:$0xff] }
 0x196   :  { %3570 = vmatpush1.bf16.msra.mxu0 %v4104_v26  ;;  %3734 = vmatpush1.bf16.msra.mxu1 %v4106_v27  ;;  %v267_v26 = vld [vmem:[#allocation8 + $0x5d0] sm:$0xff] }
 0x197   :  { %3580 = vmatprep.subr.bf16.mxu0 %v4113_v28  ;;  %3744 = vmatprep.subr.bf16.mxu1 %v4115_v29  ;;  %v271_v27 = vld [vmem:[#allocation8 + $0x5f0] sm:$0xff]  ;;  %v3940_v28 = vmul.f32 %v4871_v56, %v4865_v46  ;;  %v268_v29 = vld [vmem:[#allocation8 + $0x5d8] sm:$0xff] }
 0x198   :  { %v4168_v43 = vcombine.low %v267_v26, %v271_v27 }
 0x199   :  { %3572 = vmatmul.mubr.bf16.vlgmr.msra.gmra.mrb[4].mxu0 %v4817_v25  ;;  %3736 = vmatmul.mubr.bf16.vlgmr.msra.gmra.mrb[4].mxu1 %v4817_v25  ;;  %v3931_v25 = vmul.f32 %v4865_v46, %v4865_v46  ;;  %v283_v46 = vld [vmem:[#allocation8 + $0x650] sm:$0xff] }
 0x19a   :  { %3581 = vmatpush1.bf16.msra.mxu0 %v4112_v33  ;;  %3745 = vmatpush1.bf16.msra.mxu1 %v4114_v36  ;;  %v4169_v33 = vcombine.high %v267_v26, %v271_v27  ;;  %v4171_v36 = vcombine.high %v268_v29, %v272_v59 }
 0x19b   :  { %3582 = vmatprep.subr.bf16.mxu0 %v4121_v37  ;;  %3746 = vmatprep.subr.bf16.mxu1 %v4123_v38  ;;  %v3934_v61 = vmul.f32 %v4871_v56, %v3931_v25  ;;  %v275_v37 = vld [vmem:[#allocation8 + $0x610] sm:$0xff] }
 0x19c   :  { %3612 = vmatprep.mubr.bf16.mxu0 %v4821_v34  ;;  %3776 = vmatprep.mubr.bf16.mxu1 %v4821_v34  ;;  %v4876_v34 = vstv %s3935_s27  ;;  %v279_v38 = vld [vmem:[#allocation8 + $0x630] sm:$0xff] }
 0x19d   :  { %v3938_v3 = vadd.f32 %v4876_v34, %v3934_v61  ;;  %v4176_v25 = vcombine.low %v275_v37, %v279_v38  ;;  %v4186_v61 = vcombine.low %v284_v48, %v288_v49 }
 0x19e   :  { %3583 = vmatpush1.bf16.msra.mxu0 %v4120_v53  ;;  %3747 = vmatpush1.bf16.msra.mxu1 %v4122_v9  ;;  %v4170_v53 = vcombine.low %v268_v29, %v272_v59  ;;  %v4177_v9 = vcombine.high %v275_v37, %v279_v38  ;;  %v323_v29 = vld [vmem:[#allocation8 + $0x790] sm:$0xff] }
 0x19f   :  { %3584 = vmatprep.subr.bf16.mxu0 %v4129_v45  ;;  %3748 = vmatprep.subr.bf16.mxu1 %v4131_v47  ;;  %4559 = vrcp.f32 %v3938_v3  ;;  %v4179_v45 = vcombine.high %v276_v41, %v280_v42  ;;  %v287_v47 = vld [vmem:[#allocation8 + $0x670] sm:$0xff]  ;;  %v332_v42 = vld [vmem:[#allocation8 + $0x7d8] sm:$0xff] }
 0x1a0   :  { %v4185_v51 = vcombine.high %v283_v46, %v287_v47  ;;  %v4184_v60 = vcombine.low %v283_v46, %v287_v47  ;;  %v303_v3 = vld [vmem:[#allocation8 + $0x6f0] sm:$0xff] }
 0x1a1   :  { %v327_v59 = vld [vmem:[#allocation8 + $0x7b0] sm:$0xff] }
 0x1a2   :  { %3585 = vmatpush1.bf16.msra.mxu0 %v4128_v52  ;;  %3749 = vmatpush1.bf16.msra.mxu1 %v4130_v54  ;;  %v4187_v52 = vcombine.high %v284_v48, %v288_v49  ;;  %v291_v54 = vld [vmem:[#allocation8 + $0x690] sm:$0xff]  ;;  %v340_v49 = vld [vmem:[#allocation8 + $0x818] sm:$0xff] }
 0x1a3   :  { %3586 = vmatprep.subr.bf16.mxu0 %v4137_v55  ;;  %3750 = vmatprep.subr.bf16.mxu1 %v4139_v57  ;;  %v295_v55 = vld [vmem:[#allocation8 + $0x6b0] sm:$0xff]  ;;  %v292_v57 = vld [vmem:[#allocation8 + $0x698] sm:$0xff] }
 0x1a4   :  { %v4193_v62 = vcombine.high %v291_v54, %v295_v55  ;;  %v4195_v0 = vcombine.high %v292_v57, %v296_v58  ;;  %v4194_v7 = vcombine.low %v292_v57, %v296_v58  ;;  %v331_v38 = vld [vmem:[#allocation8 + $0x7d0] sm:$0xff]  ;;  %v348_v58 = vld [vmem:[#allocation8 + $0x858] sm:$0xff] }
 0x1a5   :  { %v335_v41 = vld [vmem:[#allocation8 + $0x7f0] sm:$0xff] }
 0x1a6   :  { %3587 = vmatpush1.bf16.msra.mxu0 %v4136_v1  ;;  %3751 = vmatpush1.bf16.msra.mxu1 %v4138_v4  ;;  %v299_v1 = vld [vmem:[#allocation8 + $0x6d0] sm:$0xff]  ;;  %v300_v4 = vld [vmem:[#allocation8 + $0x6d8] sm:$0xff] }
 0x1a7   :  { %3588 = vmatprep.subr.bf16.mxu0 %v4145_v5  ;;  %3752 = vmatprep.subr.bf16.mxu1 %v4147_v6  ;;  %v304_v5 = vld [vmem:[#allocation8 + $0x6f8] sm:$0xff]  ;;  %v4192_v6 = vcombine.low %v291_v54, %v295_v55  ;;  %v4201_v8 = vcombine.high %v299_v1, %v303_v3  ;;  %v339_v47 = vld [vmem:[#allocation8 + $0x810] sm:$0xff] }
 0x1a8   :  { %v4203_v10 = vcombine.high %v300_v4, %v304_v5  ;;  %v4202_v17 = vcombine.low %v300_v4, %v304_v5  ;;  %v343_v48 = vld [vmem:[#allocation8 + $0x830] sm:$0xff]  ;;  %v356_v5 = vld [vmem:[#allocation8 + $0x898] sm:$0xff] }
 0x1a9   :  { %v4560_v31 = vpop.eup %4559  ;;  %v347_v55 = vld [vmem:[#allocation8 + $0x850] sm:$0xff] }
 0x1aa   :  { %3589 = vmatpush1.bf16.msra.mxu0 %v4144_v13  ;;  %3753 = vmatpush1.bf16.msra.mxu1 %v4146_v14  ;;  %v4881_v39 = vmul.f32 %v4560_v31, %v3940_v28  ;;  %v311_v13 = vld [vmem:[#allocation8 + $0x730] sm:$0xff]  ;;  %v308_v14 = vld [vmem:[#allocation8 + $0x718] sm:$0xff] }
 0x1ab   :  { %3590 = vmatprep.subr.bf16.mxu0 %v4153_v15  ;;  %3754 = vmatprep.subr.bf16.mxu1 %v4155_v16  ;;  %v312_v15 = vld [vmem:[#allocation8 + $0x738] sm:$0xff]  ;;  %v4200_v16 = vcombine.low %v299_v1, %v303_v3  ;;  %v4209_v18 = vcombine.high %v307_v11, %v311_v13  ;;  %v351_v57 = vld [vmem:[#allocation8 + $0x870] sm:$0xff] }
 0x1ac   :  { %v4211_v19 = vcombine.high %v308_v14, %v312_v15  ;;  %v4210_v26 = vcombine.low %v308_v14, %v312_v15  ;;  %v328_v31 = vld [vmem:[#allocation8 + $0x7b8] sm:$0xff]  ;;  %v355_v3 = vld [vmem:[#allocation8 + $0x890] sm:$0xff] }
 0x1ad   :  { %v359_v4 = vld [vmem:[#allocation8 + $0x8b0] sm:$0xff]  ;;  %v364_v15 = vld [vmem:[#allocation8 + $0x8d8] sm:$0xff] }
 0x1ae   :  { %3591 = vmatpush1.bf16.msra.mxu0 %v4152_v21  ;;  %3755 = vmatpush1.bf16.msra.mxu1 %v4154_v22  ;;  %v319_v21 = vld [vmem:[#allocation8 + $0x770] sm:$0xff]  ;;  %v316_v22 = vld [vmem:[#allocation8 + $0x758] sm:$0xff] }
 0x1af   :  { %3592 = vmatprep.subr.bf16.mxu0 %v4161_v23  ;;  %3756 = vmatprep.subr.bf16.mxu1 %v4163_v24  ;;  %v320_v23 = vld [vmem:[#allocation8 + $0x778] sm:$0xff]  ;;  %v4208_v24 = vcombine.low %v307_v11, %v311_v13  ;;  %v4217_v27 = vcombine.high %v315_v20, %v319_v21  ;;  %v363_v13 = vld [vmem:[#allocation8 + $0x8d0] sm:$0xff] }
 0x1b0   :  { %v4219_v28 = vcombine.high %v316_v22, %v320_v23  ;;  %v367_v14 = vld [vmem:[#allocation8 + $0x8f0] sm:$0xff] }
 0x1b2   :  { %3593 = vmatpush1.bf16.msra.mxu0 %v4160_v30  ;;  %3757 = vmatpush1.bf16.msra.mxu1 %v4162_v32  ;;  %v324_v30 = vld [vmem:[#allocation8 + $0x798] sm:$0xff]  ;;  %v4216_v32 = vcombine.low %v315_v20, %v319_v21  ;;  %v371_v20 = vld [vmem:[#allocation8 + $0x910] sm:$0xff] }
 0x1b3   :  { %3594 = vmatprep.subr.bf16.mxu0 %v4169_v33  ;;  %3758 = vmatprep.subr.bf16.mxu1 %v4171_v36  ;;  %v4218_v33 = vcombine.low %v316_v22, %v320_v23  ;;  %v4225_v36 = vcombine.high %v323_v29, %v327_v59  ;;  %v4227_v37 = vcombine.high %v324_v30, %v328_v31  ;;  %v375_v21 = vld [vmem:[#allocation8 + $0x930] sm:$0xff]  ;;  %v372_v22 = vld [vmem:[#allocation8 + $0x918] sm:$0xff] }
 0x1b4   :  { %v376_v23 = vld [vmem:[#allocation8 + $0x938] sm:$0xff] }
 0x1b6   :  { %3595 = vmatpush1.bf16.msra.mxu0 %v4168_v43  ;;  %3759 = vmatpush1.bf16.msra.mxu1 %v4170_v53  ;;  %v336_v43 = vld [vmem:[#allocation8 + $0x7f8] sm:$0xff]  ;;  %v4224_v53 = vcombine.low %v323_v29, %v327_v59  ;;  %v383_v29 = vld [vmem:[#allocation8 + $0x970] sm:$0xff] }
 0x1b7   :  { %3596 = vmatprep.subr.bf16.mxu0 %v4177_v9  ;;  %3760 = vmatprep.subr.bf16.mxu1 %v4179_v45  ;;  %v4226_v9 = vcombine.low %v324_v30, %v328_v31  ;;  %v4233_v45 = vcombine.high %v331_v38, %v335_v41  ;;  %v4235_v46 = vcombine.high %v332_v42, %v336_v43  ;;  %v380_v59 = vld [vmem:[#allocation8 + $0x958] sm:$0xff] }
 0x1b8   :  { %v384_v30 = vld [vmem:[#allocation8 + $0x978] sm:$0xff]  ;;  %v4272_v31 = vcombine.low %v371_v20, %v375_v21 }
 0x1ba   :  { %3597 = vmatpush1.bf16.msra.mxu0 %v4176_v25  ;;  %3761 = vmatpush1.bf16.msra.mxu1 %v4178_v50  ;;  %v344_v25 = vld [vmem:[#allocation8 + $0x838] sm:$0xff]  ;;  %v4232_v50 = vcombine.low %v331_v38, %v335_v41  ;;  %v391_v38 = vld [vmem:[#allocation8 + $0x9b0] sm:$0xff] }
 0x1bb   :  { %3598 = vmatprep.subr.bf16.mxu0 %v4185_v51  ;;  %3762 = vmatprep.subr.bf16.mxu1 %v4187_v52  ;;  %v4234_v51 = vcombine.low %v332_v42, %v336_v43  ;;  %v4241_v52 = vcombine.high %v339_v47, %v343_v48  ;;  %v4243_v54 = vcombine.high %v340_v49, %v344_v25  ;;  %v388_v41 = vld [vmem:[#allocation8 + $0x998] sm:$0xff] }
 0x1bc   :  { %v392_v42 = vld [vmem:[#allocation8 + $0x9b8] sm:$0xff] }
 0x1be   :  { %3599 = vmatpush1.bf16.msra.mxu0 %v4184_v60  ;;  %3763 = vmatpush1.bf16.msra.mxu1 %v4186_v61  ;;  %v352_v60 = vld [vmem:[#allocation8 + $0x878] sm:$0xff]  ;;  %v4240_v61 = vcombine.low %v339_v47, %v343_v48  ;;  %v399_v47 = vld [vmem:[#allocation8 + $0x9f0] sm:$0xff] }
 0x1bf   :  { %3600 = vmatprep.subr.bf16.mxu0 %v4193_v62  ;;  %3764 = vmatprep.subr.bf16.mxu1 %v4195_v0  ;;  %v4242_v62 = vcombine.low %v340_v49, %v344_v25  ;;  %v4249_v0 = vcombine.high %v347_v55, %v351_v57  ;;  %v4251_v1 = vcombine.high %v348_v58, %v352_v60  ;;  %v396_v48 = vld [vmem:[#allocation8 + $0x9d8] sm:$0xff] }
 0x1c0   :  { %v400_v49 = vld [vmem:[#allocation8 + $0x9f8] sm:$0xff] }
 0x1c2   :  { %3601 = vmatpush1.bf16.msra.mxu0 %v4192_v6  ;;  %3765 = vmatpush1.bf16.msra.mxu1 %v4194_v7  ;;  %v360_v6 = vld [vmem:[#allocation8 + $0x8b8] sm:$0xff]  ;;  %v4248_v7 = vcombine.low %v347_v55, %v351_v57  ;;  %v407_v55 = vld [vmem:[#allocation8 + $0xa30] sm:$0xff] }
 0x1c3   :  { %3602 = vmatprep.subr.bf16.mxu0 %v4201_v8  ;;  %3766 = vmatprep.subr.bf16.mxu1 %v4203_v10  ;;  %v4250_v8 = vcombine.low %v348_v58, %v352_v60  ;;  %v4257_v10 = vcombine.high %v355_v3, %v359_v4  ;;  %v4259_v11 = vcombine.high %v356_v5, %v360_v6  ;;  %v404_v57 = vld [vmem:[#allocation8 + $0xa18] sm:$0xff] }
 0x1c4   :  { %v408_v58 = vld [vmem:[#allocation8 + $0xa38] sm:$0xff] }
 0x1c6   :  { %3603 = vmatpush1.bf16.msra.mxu0 %v4200_v16  ;;  %3767 = vmatpush1.bf16.msra.mxu1 %v4202_v17  ;;  %v368_v16 = vld [vmem:[#allocation8 + $0x8f8] sm:$0xff]  ;;  %v4256_v17 = vcombine.low %v355_v3, %v359_v4  ;;  %v415_v3 = vld [vmem:[#allocation8 + $0xa70] sm:$0xff] }
 0x1c7   :  { %3604 = vmatprep.subr.bf16.mxu0 %v4209_v18  ;;  %3768 = vmatprep.subr.bf16.mxu1 %v4211_v19  ;;  %v4265_v18 = vcombine.high %v363_v13, %v367_v14  ;;  %v4267_v19 = vcombine.high %v364_v15, %v368_v16  ;;  %v412_v4 = vld [vmem:[#allocation8 + $0xa58] sm:$0xff] }
 0x1ca   :  { %3605 = vmatpush1.bf16.msra.mxu0 %v4208_v24  ;;  %3769 = vmatpush1.bf16.msra.mxu1 %v4210_v26  ;;  %v4264_v24 = vcombine.low %v363_v13, %v367_v14  ;;  %v4266_v26 = vcombine.low %v364_v15, %v368_v16  ;;  %v423_v13 = vld [vmem:[#allocation8 + $0xab0] sm:$0xff]  ;;  %v420_v14 = vld [vmem:[#allocation8 + $0xa98] sm:$0xff] }
 0x1cb   :  { %3606 = vmatprep.subr.bf16.mxu0 %v4217_v27  ;;  %3770 = vmatprep.subr.bf16.mxu1 %v4219_v28  ;;  %v4273_v27 = vcombine.high %v371_v20, %v375_v21  ;;  %v379_v28 = vld [vmem:[#allocation8 + $0x950] sm:$0xff]  ;;  %v424_v15 = vld [vmem:[#allocation8 + $0xab8] sm:$0xff] }
 0x1cc   :  { %v4280_v43 = vcombine.low %v379_v28, %v383_v29  ;;  %v431_v20 = vld [vmem:[#allocation8 + $0xaf0] sm:$0xff]  ;;  %v428_v21 = vld [vmem:[#allocation8 + $0xad8] sm:$0xff] }
 0x1ce   :  { %3607 = vmatpush1.bf16.msra.mxu0 %v4216_v32  ;;  %3771 = vmatpush1.bf16.msra.mxu1 %v4218_v33  ;;  %v4274_v32 = vcombine.low %v372_v22, %v376_v23  ;;  %v4281_v33 = vcombine.high %v379_v28, %v383_v29  ;;  %v439_v28 = vld [vmem:[#allocation8 + $0xb30] sm:$0xff]  ;;  %v436_v29 = vld [vmem:[#allocation8 + $0xb18] sm:$0xff] }
 0x1cf   :  { %3608 = vmatprep.subr.bf16.mxu0 %v4225_v36  ;;  %3772 = vmatprep.subr.bf16.mxu1 %v4227_v37  ;;  %v4283_v36 = vcombine.high %v380_v59, %v384_v30  ;;  %v387_v37 = vld [vmem:[#allocation8 + $0x990] sm:$0xff] }
 0x1d0   :  { %v4288_v25 = vcombine.low %v387_v37, %v391_v38 }
 0x1d2   :  { %3609 = vmatpush1.bf16.msra.mxu0 %v4224_v53  ;;  %3773 = vmatpush1.bf16.msra.mxu1 %v4226_v9  ;;  %v4282_v53 = vcombine.low %v380_v59, %v384_v30  ;;  %v4289_v9 = vcombine.high %v387_v37, %v391_v38  ;;  %v440_v59 = vld [vmem:[#allocation8 + $0xb38] sm:$0xff]  ;;  %v447_v37 = vld [vmem:[#allocation8 + $0xb70] sm:$0xff] }
 0x1d3   :  { %3610 = vmatprep.subr.bf16.mxu0 %v4233_v45  ;;  %3774 = vmatprep.subr.bf16.mxu1 %v4235_v46  ;;  %v4291_v45 = vcombine.high %v388_v41, %v392_v42  ;;  %v395_v46 = vld [vmem:[#allocation8 + $0x9d0] sm:$0xff]  ;;  %v444_v38 = vld [vmem:[#allocation8 + $0xb58] sm:$0xff] }
 0x1d4   :  { %v4296_v60 = vcombine.low %v395_v46, %v399_v47 }
 0x1d6   :  { %3611 = vmatpush1.bf16.msra.mxu0 %v4232_v50  ;;  %3775 = vmatpush1.bf16.msra.mxu1 %v4234_v51  ;;  %v4290_v50 = vcombine.low %v388_v41, %v392_v42  ;;  %v4297_v51 = vcombine.high %v395_v46, %v399_v47  ;;  %v448_v41 = vld [vmem:[#allocation8 + $0xb78] sm:$0xff]  ;;  %v455_v46 = vld [vmem:[#allocation8 + $0xbb0] sm:$0xff] }
 0x1d7   :  { %3621 = vmatprep.subr.bf16.mxu0 %v4241_v52  ;;  %3785 = vmatprep.subr.bf16.mxu1 %v4243_v54  ;;  %v4299_v52 = vcombine.high %v396_v48, %v400_v49  ;;  %v403_v54 = vld [vmem:[#allocation8 + $0xa10] sm:$0xff]  ;;  %v452_v47 = vld [vmem:[#allocation8 + $0xb98] sm:$0xff] }
 0x1d9   :  { %3613 = vmatmul.mubr.bf16.vlgmr.msra.gmra.mrb[4].mxu0 %v4835_v40  ;;  %3777 = vmatmul.mubr.bf16.vlgmr.msra.gmra.mrb[4].mxu1 %v4835_v40  ;;  %v4258_v40 = vcombine.low %v356_v5, %v360_v6  ;;  %v416_v5 = vld [vmem:[#allocation8 + $0xa78] sm:$0xff]  ;;  %v4304_v6 = vcombine.low %v403_v54, %v407_v55 }
 0x1da   :  { %3622 = vmatpush1.bf16.msra.mxu0 %v4240_v61  ;;  %3786 = vmatpush1.bf16.msra.mxu1 %v4242_v62  ;;  %v4298_v61 = vcombine.low %v396_v48, %v400_v49  ;;  %v4305_v62 = vcombine.high %v403_v54, %v407_v55  ;;  %v456_v48 = vld [vmem:[#allocation8 + $0xbb8] sm:$0xff]  ;;  %v463_v54 = vld [vmem:[#allocation8 + $0xbf0] sm:$0xff] }
 0x1db   :  { %3623 = vmatprep.subr.bf16.mxu0 %v4249_v0  ;;  %3787 = vmatprep.subr.bf16.mxu1 %v4251_v1  ;;  %v4307_v0 = vcombine.high %v404_v57, %v408_v58  ;;  %v411_v1 = vld [vmem:[#allocation8 + $0xa50] sm:$0xff]  ;;  %v460_v55 = vld [vmem:[#allocation8 + $0xbd8] sm:$0xff] }
 0x1dc   :  { %3653 = vmatprep.mubr.bf16.mxu0 %v4824_v63  ;;  %3817 = vmatprep.mubr.bf16.mxu1 %v4824_v63  ;;  %v4275_v63 = vcombine.high %v372_v22, %v376_v23  ;;  %v4312_v16 = vcombine.low %v411_v1, %v415_v3  ;;  %v432_v22 = vld [vmem:[#allocation8 + $0xaf8] sm:$0xff] }
 0x1de   :  { %3624 = vmatpush1.bf16.msra.mxu0 %v4248_v7  ;;  %3788 = vmatpush1.bf16.msra.mxu1 %v4250_v8  ;;  %v4306_v7 = vcombine.low %v404_v57, %v408_v58  ;;  %v4313_v8 = vcombine.high %v411_v1, %v415_v3  ;;  %v464_v57 = vld [vmem:[#allocation8 + $0xbf8] sm:$0xff]  ;;  %v4887_v58 = vld [vmem:[#allocation11] sm:$0xff] }
 0x1df   :  { %3625 = vmatprep.subr.bf16.mxu0 %v4257_v10  ;;  %3789 = vmatprep.subr.bf16.mxu1 %v4259_v11  ;;  %v4315_v10 = vcombine.high %v412_v4, %v416_v5  ;;  %v419_v11 = vld [vmem:[#allocation8 + $0xa90] sm:$0xff] }
 0x1e0   :  { %v4320_v23 = vcombine.low %v419_v11, %v423_v13  ;;  %v467_v1 = vld [vmem:[#allocation8 + $0xc10] sm:$0xff] }
 0x1e1   :  { %v471_v3 = vld [vmem:[#allocation8 + $0xc30] sm:$0xff] }
 0x1e2   :  { %3626 = vmatpush1.bf16.msra.mxu0 %v4256_v17  ;;  %3790 = vmatpush1.bf16.msra.mxu1 %v4258_v40  ;;  %v4314_v17 = vcombine.low %v412_v4, %v416_v5  ;;  %v4321_v40 = vcombine.high %v419_v11, %v423_v13  ;;  %v3930_v4 = vmul.f32 %v4887_v58, %v4887_v58  ;;  %v468_v5 = vld [vmem:[#allocation8 + $0xc18] sm:$0xff] }
 0x1e3   :  { %3627 = vmatprep.subr.bf16.mxu0 %v4265_v18  ;;  %3791 = vmatprep.subr.bf16.mxu1 %v4267_v19  ;;  %v4323_v18 = vcombine.high %v420_v14, %v424_v15  ;;  %v427_v19 = vld [vmem:[#allocation8 + $0xad0] sm:$0xff] }
 0x1e4   :  { %v4328_v30 = vcombine.low %v427_v19, %v431_v20  ;;  %v3933_v13 = vmul.f32 %v4871_v56, %v3930_v4 }
 0x1e6   :  { %3628 = vmatpush1.bf16.msra.mxu0 %v4264_v24  ;;  %3792 = vmatpush1.bf16.msra.mxu1 %v4266_v26  ;;  %v4322_v24 = vcombine.low %v420_v14, %v424_v15  ;;  %v4329_v26 = vcombine.high %v427_v19, %v431_v20  ;;  %v475_v14 = vld [vmem:[#allocation8 + $0xc50] sm:$0xff]  ;;  %v3937_v20 = vadd.f32 %v4876_v34, %v3933_v13 }
 0x1e7   :  { %3629 = vmatprep.subr.bf16.mxu0 %v4273_v27  ;;  %3793 = vmatprep.subr.bf16.mxu1 %v4275_v63  ;;  %v4331_v27 = vcombine.high %v428_v21, %v432_v22  ;;  %v435_v63 = vld [vmem:[#allocation8 + $0xb10] sm:$0xff] }
 0x1e8   :  { %v4336_v42 = vcombine.low %v435_v63, %v439_v28  ;;  %v479_v15 = vld [vmem:[#allocation8 + $0xc70] sm:$0xff]  ;;  %4561 = vrcp.f32 %v3937_v20 }
 0x1e9   :  { %v4377_v19 = vcombine.high %v475_v14, %v479_v15  ;;  %v495_v34 = vld [vmem:[#allocation8 + $0xcf0] sm:$0xff] }
 0x1ea   :  { %3630 = vmatpush1.bf16.msra.mxu0 %v4272_v31  ;;  %3794 = vmatpush1.bf16.msra.mxu1 %v4274_v32  ;;  %v4330_v31 = vcombine.low %v428_v21, %v432_v22  ;;  %v4337_v32 = vcombine.high %v435_v63, %v439_v28  ;;  %v483_v22 = vld [vmem:[#allocation8 + $0xc90] sm:$0xff] }
 0x1eb   :  { %3631 = vmatprep.subr.bf16.mxu0 %v4281_v33  ;;  %3795 = vmatprep.subr.bf16.mxu1 %v4283_v36  ;;  %v4339_v33 = vcombine.high %v436_v29, %v440_v59  ;;  %v443_v36 = vld [vmem:[#allocation8 + $0xb50] sm:$0xff] }
 0x1ec   :  { %v4344_v49 = vcombine.low %v443_v36, %v447_v37 }
 0x1ee   :  { %3632 = vmatpush1.bf16.msra.mxu0 %v4280_v43  ;;  %3796 = vmatpush1.bf16.msra.mxu1 %v4282_v53  ;;  %v4338_v43 = vcombine.low %v436_v29, %v440_v59  ;;  %v4345_v53 = vcombine.high %v443_v36, %v447_v37  ;;  %v491_v59 = vld [vmem:[#allocation8 + $0xcd0] sm:$0xff] }
 0x1ef   :  { %3633 = vmatprep.subr.bf16.mxu0 %v4289_v9  ;;  %3797 = vmatprep.subr.bf16.mxu1 %v4291_v45  ;;  %v4347_v9 = vcombine.high %v444_v38, %v448_v41  ;;  %v451_v45 = vld [vmem:[#allocation8 + $0xb90] sm:$0xff] }
 0x1f0   :  { %v499_v37 = vld [vmem:[#allocation8 + $0xd10] sm:$0xff] }
 0x1f2   :  { %3634 = vmatpush1.bf16.msra.mxu0 %v4288_v25  ;;  %3798 = vmatpush1.bf16.msra.mxu1 %v4290_v50  ;;  %v4346_v25 = vcombine.low %v444_v38, %v448_v41  ;;  %v4353_v50 = vcombine.high %v451_v45, %v455_v46  ;;  %v503_v38 = vld [vmem:[#allocation8 + $0xd30] sm:$0xff]  ;;  %v500_v41 = vld [vmem:[#allocation8 + $0xd18] sm:$0xff] }
 0x1f3   :  { %3635 = vmatprep.subr.bf16.mxu0 %v4297_v51  ;;  %3799 = vmatprep.subr.bf16.mxu1 %v4299_v52  ;;  %v4355_v51 = vcombine.high %v452_v47, %v456_v48  ;;  %v459_v52 = vld [vmem:[#allocation8 + $0xbd0] sm:$0xff] }
 0x1f6   :  { %3636 = vmatpush1.bf16.msra.mxu0 %v4296_v60  ;;  %3800 = vmatpush1.bf16.msra.mxu1 %v4298_v61  ;;  %v4352_v60 = vcombine.low %v451_v45, %v455_v46  ;;  %v4354_v61 = vcombine.low %v452_v47, %v456_v48  ;;  %v4702_v45 = vmov 1983009808   ;;  %v507_v47 = vld [vmem:[#allocation8 + $0xd50] sm:$0xff] }
 0x1f7   :  { %3637 = vmatprep.subr.bf16.mxu0 %v4305_v62  ;;  %3801 = vmatprep.subr.bf16.mxu1 %v4307_v0  ;;  %v4361_v62 = vcombine.high %v459_v52, %v463_v54  ;;  %v4363_v0 = vcombine.high %v460_v55, %v464_v57  ;;  %v3878_v46 = vunpack.c.l.s4 %v4702_v45  ;;  %v511_v48 = vld [vmem:[#allocation8 + $0xd70] sm:$0xff] }
 0x1f8   :  { %v4408_v4 = vcombine.low %v507_v47, %v511_v48 }
 0x1fa   :  { %3638 = vmatpush1.bf16.msra.mxu0 %v4304_v6  ;;  %3802 = vmatpush1.bf16.msra.mxu1 %v4306_v7  ;;  %v472_v6 = vld [vmem:[#allocation8 + $0xc38] sm:$0xff]  ;;  %v4360_v7 = vcombine.low %v459_v52, %v463_v54  ;;  %v4400_v52 = vcombine.low %v499_v37, %v503_v38 }
 0x1fb   :  { %3639 = vmatprep.subr.bf16.mxu0 %v4313_v8  ;;  %3803 = vmatprep.subr.bf16.mxu1 %v4315_v10  ;;  %v4362_v8 = vcombine.low %v460_v55, %v464_v57  ;;  %v4369_v10 = vcombine.high %v467_v1, %v471_v3  ;;  %v4371_v11 = vcombine.high %v468_v5, %v472_v6  ;;  %v3879_v57 = vunpack.c.0.s8 %v3878_v46 }
 0x1fc   :  { %v4409_v55 = vcombine.high %v507_v47, %v511_v48 }
 0x1fe   :  { %3640 = vmatpush1.bf16.msra.mxu0 %v4312_v16  ;;  %3804 = vmatpush1.bf16.msra.mxu1 %v4314_v17  ;;  %v476_v16 = vld [vmem:[#allocation8 + $0xc58] sm:$0xff] }
 0x1ff   :  { %3641 = vmatprep.subr.bf16.mxu0 %v4321_v40  ;;  %3805 = vmatprep.subr.bf16.mxu1 %v4323_v18  ;;  %v480_v17 = vld [vmem:[#allocation8 + $0xc78] sm:$0xff]  ;;  %v4368_v40 = vcombine.low %v467_v1, %v471_v3  ;;  %v4370_v18 = vcombine.low %v468_v5, %v472_v6 }
 0x200   :  { %v4379_v21 = vcombine.high %v476_v16, %v480_v17  ;;  %v4378_v63 = vcombine.low %v476_v16, %v480_v17  ;;  %v516_v1 = vld [vmem:[#allocation8 + $0xd98] sm:$0xff] }
 0x201   :  { %v520_v3 = vld [vmem:[#allocation8 + $0xdb8] sm:$0xff] }
 0x202   :  { %3642 = vmatpush1.bf16.msra.mxu0 %v4320_v23  ;;  %3806 = vmatpush1.bf16.msra.mxu1 %v4322_v24  ;;  %v487_v23 = vld [vmem:[#allocation8 + $0xcb0] sm:$0xff]  ;;  %v484_v24 = vld [vmem:[#allocation8 + $0xc98] sm:$0xff] }
 0x203   :  { %3643 = vmatprep.subr.bf16.mxu0 %v4329_v26  ;;  %3807 = vmatprep.subr.bf16.mxu1 %v4331_v27  ;;  %v488_v26 = vld [vmem:[#allocation8 + $0xcb8] sm:$0xff]  ;;  %v4376_v27 = vcombine.low %v475_v14, %v479_v15  ;;  %v4385_v28 = vcombine.high %v483_v22, %v487_v23 }
 0x204   :  { %v4387_v29 = vcombine.high %v484_v24, %v488_v26  ;;  %v524_v16 = vld [vmem:[#allocation8 + $0xdd8] sm:$0xff] }
 0x205   :  { %v528_v17 = vld [vmem:[#allocation8 + $0xdf8] sm:$0xff] }
 0x206   :  { %3644 = vmatpush1.bf16.msra.mxu0 %v4328_v30  ;;  %3808 = vmatpush1.bf16.msra.mxu1 %v4330_v31  ;;  %v492_v30 = vld [vmem:[#allocation8 + $0xcd8] sm:$0xff] }
 0x207   :  { %3645 = vmatprep.subr.bf16.mxu0 %v4337_v32  ;;  %3809 = vmatprep.subr.bf16.mxu1 %v4339_v33  ;;  %v496_v31 = vld [vmem:[#allocation8 + $0xcf8] sm:$0xff]  ;;  %v4384_v32 = vcombine.low %v483_v22, %v487_v23  ;;  %v4393_v33 = vcombine.high %v491_v59, %v495_v34  ;;  %v4418_v23 = vcombine.low %v516_v1, %v520_v3 }
 0x208   :  { %v4395_v36 = vcombine.high %v492_v30, %v496_v31 }
 0x20a   :  { %3646 = vmatpush1.bf16.msra.mxu0 %v4336_v42  ;;  %3810 = vmatpush1.bf16.msra.mxu1 %v4338_v43  ;;  %v504_v42 = vld [vmem:[#allocation8 + $0xd38] sm:$0xff]  ;;  %v4392_v43 = vcombine.low %v491_v59, %v495_v34 }
 0x20b   :  { %3647 = vmatprep.subr.bf16.mxu0 %v4345_v53  ;;  %3811 = vmatprep.subr.bf16.mxu1 %v4347_v9  ;;  %v4394_v53 = vcombine.low %v492_v30, %v496_v31  ;;  %v4401_v9 = vcombine.high %v499_v37, %v503_v38  ;;  %v4402_v54 = vcombine.low %v500_v41, %v504_v42  ;;  %v532_v30 = vld [vmem:[#allocation8 + $0xe18] sm:$0xff] }
 0x20c   :  { %v536_v31 = vld [vmem:[#allocation8 + $0xe38] sm:$0xff] }
 0x20d   :  { %v4435_v38 = vcombine.high %v532_v30, %v536_v31  ;;  %v4434_v45 = vcombine.low %v532_v30, %v536_v31  ;;  %v588_v30 = vld [vmem:[#allocation8 + $0xfd8] sm:$0xff] }
 0x20e   :  { %3648 = vmatpush1.bf16.msra.mxu0 %v4344_v49  ;;  %3812 = vmatpush1.bf16.msra.mxu1 %v4346_v25  ;;  %v3939_v49 = vmul.f32 %v4871_v56, %v4887_v58  ;;  %v508_v25 = vld [vmem:[#allocation8 + $0xd58] sm:$0xff] }
 0x20f   :  { %3649 = vmatprep.subr.bf16.mxu0 %v4353_v50  ;;  %3813 = vmatprep.subr.bf16.mxu1 %v4355_v51  ;;  %v512_v50 = vld [vmem:[#allocation8 + $0xd78] sm:$0xff]  ;;  %v4562_v51 = vpop.eup %4561 }
 0x210   :  { %v4410_v56 = vcombine.low %v508_v25, %v512_v50  ;;  %v592_v31 = vld [vmem:[#allocation8 + $0xff8] sm:$0xff] }
 0x212   :  { %3650 = vmatpush1.bf16.msra.mxu0 %v4352_v60  ;;  %3814 = vmatpush1.bf16.msra.mxu1 %v4354_v61  ;;  %v4411_v60 = vcombine.high %v508_v25, %v512_v50  ;;  %v515_v61 = vld [vmem:[#allocation8 + $0xd90] sm:$0xff]  ;;  %v548_v50 = vld [vmem:[#allocation8 + $0xe98] sm:$0xff] }
 0x213   :  { %3651 = vmatprep.subr.bf16.mxu0 %v4361_v62  ;;  %3815 = vmatprep.subr.bf16.mxu1 %v4363_v0  ;;  %v519_v62 = vld [vmem:[#allocation8 + $0xdb0] sm:$0xff]  ;;  %v3943_v0 = vmul.f32 %v4562_v51, %v3939_v49  ;;  %v552_v51 = vld [vmem:[#allocation8 + $0xeb8] sm:$0xff] }
 0x214   :  { %v4417_v5 = vcombine.high %v515_v61, %v519_v62  ;;  %v4416_v20 = vcombine.low %v515_v61, %v519_v62  ;;  %v547_v49 = vld [vmem:[#allocation8 + $0xe90] sm:$0xff] }
 0x215   :  { %v3945_v15 = vmul.f32 %v3943_v0, %v4887_v58  ;;  %v531_v58 = vld [vmem:[#allocation8 + $0xe10] sm:$0xff] }
 0x216   :  { %3652 = vmatpush1.bf16.msra.mxu0 %v4360_v7  ;;  %3816 = vmatpush1.bf16.msra.mxu1 %v4362_v8  ;;  %v4900_v7 = vsub.s32 %v3879_v57, %v4794_v44  ;;  %v4419_v8 = vcombine.high %v516_v1, %v520_v3  ;;  %v551_v25 = vld [vmem:[#allocation8 + $0xeb0] sm:$0xff]  ;;  %v560_v1 = vld [vmem:[#allocation8 + $0xef8] sm:$0xff] }
 0x217   :  { %3662 = vmatprep.subr.bf16.mxu0 %v4369_v10  ;;  %3826 = vmatprep.subr.bf16.mxu1 %v4371_v11  ;;  %v523_v10 = vld [vmem:[#allocation8 + $0xdd0] sm:$0xff]  ;;  %v3947_v34 = vsub.f32 1.0, %v3945_v15  ;;  %v4449_v57 = vcombine.high %v547_v49, %v551_v25  ;;  %v4448_v3 = vcombine.low %v547_v49, %v551_v25 }
 0x218   :  { %v527_v11 = vld [vmem:[#allocation8 + $0xdf0] sm:$0xff] }
 0x219   :  { %3654 = vmatmul.mubr.bf16.vlgmr.msra.gmra.mrb[4].mxu0 %v4827_v35  ;;  %3818 = vmatmul.mubr.bf16.vlgmr.msra.gmra.mrb[4].mxu1 %v4827_v35  ;;  %v4386_v35 = vcombine.low %v484_v24, %v488_v26  ;;  %v4425_v24 = vcombine.high %v523_v10, %v527_v11  ;;  %v555_v61 = vld [vmem:[#allocation8 + $0xed0] sm:$0xff] }
 0x21a   :  { %3663 = vmatpush1.bf16.msra.mxu0 %v4368_v40  ;;  %3827 = vmatpush1.bf16.msra.mxu1 %v4370_v18  ;;  %v559_v62 = vld [vmem:[#allocation8 + $0xef0] sm:$0xff] }
 0x21b   :  { %3664 = vmatprep.subr.bf16.mxu0 %v4377_v19  ;;  %3828 = vmatprep.subr.bf16.mxu1 %v4379_v21 }
 0x21c   :  { %3694 = vmatprep.mubr.bf16.mxu0 %v4843_v2  ;;  %3858 = vmatprep.mubr.bf16.mxu1 %v4843_v2  ;;  %v4403_v2 = vcombine.high %v500_v41, %v504_v42  ;;  %v539_v41 = vld [vmem:[#allocation8 + $0xe50] sm:$0xff] }
 0x21d   :  { %v543_v42 = vld [vmem:[#allocation8 + $0xe70] sm:$0xff] }
 0x21e   :  { %3665 = vmatpush1.bf16.msra.mxu0 %v4376_v27  ;;  %3829 = vmatpush1.bf16.msra.mxu1 %v4378_v63  ;;  %v4427_v63 = vcombine.high %v524_v16, %v528_v17  ;;  %v4441_v46 = vcombine.high %v539_v41, %v543_v42 }
 0x21f   :  { %3666 = vmatprep.subr.bf16.mxu0 %v4385_v28  ;;  %3830 = vmatprep.subr.bf16.mxu1 %v4387_v29  ;;  %v535_v28 = vld [vmem:[#allocation8 + $0xe30] sm:$0xff]  ;;  %v3951_v29 = vld [vmem:[#allocation10] sm:$0xff] }
 0x220   :  { %v3953_v37 = vmul.f32 %v3951_v29, %v3943_v0  ;;  %v556_v0 = vld [vmem:[#allocation8 + $0xed8] sm:$0xff] }
 0x222   :  { %3667 = vmatpush1.bf16.msra.mxu0 %v4384_v32  ;;  %3831 = vmatpush1.bf16.msra.mxu1 %v4386_v35  ;;  %v4424_v32 = vcombine.low %v523_v10, %v527_v11  ;;  %v4426_v35 = vcombine.low %v524_v16, %v528_v17  ;;  %v564_v10 = vld [vmem:[#allocation8 + $0xf18] sm:$0xff]  ;;  %v571_v17 = vld [vmem:[#allocation8 + $0xf50] sm:$0xff] }
 0x223   :  { %3668 = vmatprep.subr.bf16.mxu0 %v4393_v33  ;;  %3832 = vmatprep.subr.bf16.mxu1 %v4395_v36  ;;  %v4433_v36 = vcombine.high %v531_v58, %v535_v28  ;;  %v568_v11 = vld [vmem:[#allocation8 + $0xf38] sm:$0xff] }
 0x224   :  { %v4467_v16 = vcombine.high %v564_v10, %v568_v11 }
 0x226   :  { %3669 = vmatpush1.bf16.msra.mxu0 %v4392_v43  ;;  %3833 = vmatpush1.bf16.msra.mxu1 %v4394_v53  ;;  %v540_v53 = vld [vmem:[#allocation8 + $0xe58] sm:$0xff] }
 0x227   :  { %3670 = vmatprep.subr.bf16.mxu0 %v4401_v9  ;;  %3834 = vmatprep.subr.bf16.mxu1 %v4403_v2  ;;  %v544_v9 = vld [vmem:[#allocation8 + $0xe78] sm:$0xff]  ;;  %v4432_v2 = vcombine.low %v531_v58, %v535_v28 }
 0x228   :  { %v4443_v48 = vcombine.high %v540_v53, %v544_v9 }
 0x22a   :  { %3671 = vmatpush1.bf16.msra.mxu0 %v4400_v52  ;;  %3835 = vmatpush1.bf16.msra.mxu1 %v4402_v54  ;;  %v4440_v54 = vcombine.low %v539_v41, %v543_v42 }
 0x22b   :  { %3672 = vmatprep.subr.bf16.mxu0 %v4409_v55  ;;  %3836 = vmatprep.subr.bf16.mxu1 %v4411_v60  ;;  %v4442_v55 = vcombine.low %v540_v53, %v544_v9  ;;  %v4451_v60 = vcombine.high %v548_v50, %v552_v51 }
 0x22c   :  { %v3368_v6 = vpop.f32.mrb[0].mxu0  ;;  %v3532_v13 = vpop.f32.mrb[0].mxu1 }
 0x22d   :  { %v3370_v14 = vpop.f32.mrb[1].mxu0  ;;  %v3534_v18 = vpop.f32.mrb[1].mxu1 }
 0x22e   :  { %v3875_v40 = vcombine.low %v3368_v6, %v3370_v14  ;;  %v3372_v19 = vpop.f32.mrb[2].mxu0  ;;  %3673 = vmatpush1.bf16.msra.mxu0 %v4408_v4  ;;  %v3876_v21 = vcombine.low %v3532_v13, %v3534_v18  ;;  %v3536_v22 = vpop.f32.mrb[2].mxu1  ;;  %3837 = vmatpush1.bf16.msra.mxu1 %v4410_v56  ;;  %v4450_v4 = vcombine.low %v548_v50, %v552_v51  ;;  %v563_v6 = vld [vmem:[#allocation8 + $0xf10] sm:$0xff]  ;;  %v572_v18 = vld [vmem:[#allocation8 + $0xf58] sm:$0xff] }
 0x22f   :  { %v3373_v44 = vpop.f32.mrb[3].mxu0  ;;  %3674 = vmatprep.subr.bf16.mxu0 %v4417_v5  ;;  %v3537_v27 = vpop.f32.mrb[3].mxu1  ;;  %3838 = vmatprep.subr.bf16.mxu1 %v4419_v8  ;;  %v4457_v56 = vcombine.high %v555_v61, %v559_v62  ;;  %v4459_v5 = vcombine.high %v556_v0, %v560_v1  ;;  %v567_v8 = vld [vmem:[#allocation8 + $0xf30] sm:$0xff]  ;;  %v4456_v13 = vcombine.low %v555_v61, %v559_v62  ;;  %v576_v19 = vld [vmem:[#allocation8 + $0xf78] sm:$0xff] }
 0x230   :  { %v3883_v26 = vrot.slane %v3875_v40, %v4900_v7  ;;  %v3890_v59 = vrot.slane %v3876_v21, %v4900_v7  ;;  %v4458_v14 = vcombine.low %v556_v0, %v560_v1  ;;  %v4465_v15 = vcombine.high %v563_v6, %v567_v8  ;;  %v575_v40 = vld [vmem:[#allocation8 + $0xf70] sm:$0xff]  ;;  %v584_v27 = vld [vmem:[#allocation8 + $0xfb8] sm:$0xff] }
 0x231   :  { %v4466_v21 = vcombine.low %v564_v10, %v568_v11  ;;  %v4473_v22 = vcombine.high %v571_v17, %v575_v40  ;;  %v4475_v44 = vcombine.high %v572_v18, %v576_v19  ;;  %v4474_v58 = vcombine.low %v572_v18, %v576_v19 }
 0x232   :  { %3675 = vmatpush1.bf16.msra.mxu0 %v4416_v20  ;;  %v3891_v33 = vcombine.low %v3883_v26, %v3890_v59  ;;  %3839 = vmatpush1.bf16.msra.mxu1 %v4418_v23  ;;  %v4464_v20 = vcombine.low %v563_v6, %v567_v8  ;;  %v579_v23 = vld [vmem:[#allocation8 + $0xf90] sm:$0xff]  ;;  %v580_v26 = vld [vmem:[#allocation8 + $0xf98] sm:$0xff] }
 0x233   :  { %3676 = vmatprep.subr.bf16.mxu0 %v4425_v24  ;;  %3840 = vmatprep.subr.bf16.mxu1 %v4427_v63  ;;  %v583_v24 = vld [vmem:[#allocation8 + $0xfb0] sm:$0xff]  ;;  %v4472_v63 = vcombine.low %v571_v17, %v575_v40  ;;  %v4483_v29 = vcombine.high %v580_v26, %v584_v27 }
 0x234   :  { %v3949_v43 = vmul.f32 %v3947_v34, %v3891_v33  ;;  %v4481_v28 = vcombine.high %v579_v23, %v583_v24  ;;  %v587_v59 = vld [vmem:[#allocation8 + $0xfd0] sm:$0xff] }
 0x235   :  { %v591_v34 = vld [vmem:[#allocation8 + $0xff0] sm:$0xff] }
 0x236   :  { %3677 = vmatpush1.bf16.msra.mxu0 %v4424_v32  ;;  %3841 = vmatpush1.bf16.msra.mxu1 %v4426_v35  ;;  %v3955_v47 = vadd.f32 %v3953_v37, %v3949_v43  ;;  %v4480_v32 = vcombine.low %v579_v23, %v583_v24  ;;  %v4482_v35 = vcombine.low %v580_v26, %v584_v27 }
 0x237   :  { %3678 = vmatprep.subr.bf16.mxu0 %v4433_v36  ;;  %3842 = vmatprep.subr.bf16.mxu1 %v4435_v38  ;;  %v4489_v33 = vcombine.high %v587_v59, %v591_v34  ;;  %v4491_v36 = vcombine.high %v588_v30, %v592_v31  ;;  %v4488_v37 = vcombine.low %v587_v59, %v591_v34 }
 0x238   :  { %v4494_v52 = vclamps-f32 %v3955_v47, 1.0  ;;  %v4490_v38 = vcombine.low %v588_v30, %v592_v31 }
 0x23a   :  { %3679 = vmatpush1.bf16.msra.mxu0 %v4432_v2  ;;  %3843 = vmatpush1.bf16.msra.mxu1 %v4434_v45  ;;  %3961 = vst [vmem:[#allocation13] sm:$0xff] %v4494_v52  ;;  %v3952_v52 = vld [vmem:[#allocation10 + $0x8] sm:$0xff] }
 0x23b   :  { %3680 = vmatprep.subr.bf16.mxu0 %v4441_v46  ;;  %3844 = vmatprep.subr.bf16.mxu1 %v4443_v48  ;;  %v4563_v46 = vld [vmem:[#allocation11 + $0x8] sm:$0xff] }
 0x23c   :  { %v3946_v47 = vmul.f32 %v4563_v46, %v4881_v39 }
 0x23e   :  { %3681 = vmatpush1.bf16.msra.mxu0 %v4440_v54  ;;  %3845 = vmatpush1.bf16.msra.mxu1 %v4442_v55 }
 0x23f   :  { %3682 = vmatprep.subr.bf16.mxu0 %v4449_v57  ;;  %3846 = vmatprep.subr.bf16.mxu1 %v4451_v60  ;;  %v3954_v57 = vmul.f32 %v3952_v52, %v4881_v39 }
 0x242   :  { %3683 = vmatpush1.bf16.msra.mxu0 %v4448_v3  ;;  %3847 = vmatpush1.bf16.msra.mxu1 %v4450_v4 }
 0x243   :  { %3684 = vmatprep.subr.bf16.mxu0 %v4457_v56  ;;  %3848 = vmatprep.subr.bf16.mxu1 %v4459_v5 }
 0x246   :  { %3685 = vmatpush1.bf16.msra.mxu0 %v4456_v13  ;;  %3849 = vmatpush1.bf16.msra.mxu1 %v4458_v14 }
 0x247   :  { %3686 = vmatprep.subr.bf16.mxu0 %v4465_v15  ;;  %3850 = vmatprep.subr.bf16.mxu1 %v4467_v16 }
 0x24a   :  { %3687 = vmatpush1.bf16.msra.mxu0 %v4464_v20  ;;  %3851 = vmatpush1.bf16.msra.mxu1 %v4466_v21 }
 0x24b   :  { %3688 = vmatprep.subr.bf16.mxu0 %v4473_v22  ;;  %3852 = vmatprep.subr.bf16.mxu1 %v4475_v44 }
 0x24e   :  { %3689 = vmatpush1.bf16.msra.mxu0 %v4472_v63  ;;  %3853 = vmatpush1.bf16.msra.mxu1 %v4474_v58 }
 0x24f   :  { %3690 = vmatprep.subr.bf16.mxu0 %v4481_v28  ;;  %3854 = vmatprep.subr.bf16.mxu1 %v4483_v29 }
 0x252   :  { %3691 = vmatpush1.bf16.msra.mxu0 %v4480_v32  ;;  %3855 = vmatpush1.bf16.msra.mxu1 %v4482_v35 }
 0x253   :  { %3692 = vmatprep.subr.bf16.mxu0 %v4489_v33  ;;  %3856 = vmatprep.subr.bf16.mxu1 %v4491_v36 }
 0x256   :  { %3693 = vmatpush1.bf16.msra.mxu0 %v4488_v37  ;;  %3857 = vmatpush1.bf16.msra.mxu1 %v4490_v38 }
 0x259   :  { %3695 = vmatmul.mubr.bf16.vlgmr.msra.gmra.mrb[4].mxu0 %v4851_v12  ;;  %3859 = vmatmul.mubr.bf16.vlgmr.msra.gmra.mrb[4].mxu1 %v4851_v12  ;;  %v3948_v12 = vsub.f32 1.0, %v3946_v47 }
 0x32c   :  { %v3696_v41 = vpop.f32.mrb[4].mxu0  ;;  %v3860_v42 = vpop.f32.mrb[4].mxu1 }
 0x32d   :  { %v3698_v43 = vpop.f32.mrb[5].mxu0  ;;  %v3862_v9 = vpop.f32.mrb[5].mxu1 }
 0x32e   :  { %v3892_v53 = vcombine.low %v3696_v41, %v3698_v43  ;;  %v3700_v2 = vpop.f32.mrb[6].mxu0  ;;  %v3893_v45 = vcombine.low %v3860_v42, %v3862_v9  ;;  %v3864_v48 = vpop.f32.mrb[6].mxu1 }
 0x32f   :  { %v3701_v49 = vpop.f32.mrb[7].mxu0  ;;  %v3865_v50 = vpop.f32.mrb[7].mxu1 }
 0x330   :  { %v3900_v25 = vrot.slane %v3892_v53, %v4900_v7  ;;  %v3907_v51 = vrot.slane %v3893_v45, %v4900_v7 }
 0x332   :  { %v3908_v54 = vcombine.low %v3900_v25, %v3907_v51 }
 0x334   :  { %v3950_v55 = vmul.f32 %v3948_v12, %v3908_v54 }
 0x336   :  { %v3956_v60 = vadd.f32 %v3954_v57, %v3950_v55 }
 0x338   :  { %v4495_v61 = vclamps-f32 %v3956_v60, 1.0 }
 0x33a   :  { %3962 = vst [vmem:[#allocation13 + $0x8] sm:$0xff] %v4495_v61 }
 0x33b   :  { %4673 = shalt.err (!%p4670_p11)
}
 0x33c   :  { %s4674_s8 = scalar_lea.hbm %s4928_s5, 256 }
 0x33d   :  { %p4675_p12 = scmp.ne.s32.totalorder %s4928_s5, %s4674_s8  ;;  %p4678_p13 = scmp.lt.u32.totalorder %s4674_s8, %s4928_s5 }
 0x33f   :  { %p4680_p0 = pnand %p4678_p13, %p4675_p12 }
 0x341   :  { %4683 = shalt.err (!%p4680_p0)
}
 0x342   :  { %3972 = dma.vmem_to_hbm [thread:$0]  %s3970_s29, 256, %s4928_s5, [#allocation7]  }
 0x343   :  { %4692 = dma.done.wait [#allocation7], 256  }
 0x344   :  { %4693 = vsyncadd [#allocation7], 4294967040 }
 0x345   :  { %3976 = vsyncpa [#allocation6], 1 }
 0x346   :  { %3977 = vsyncpa [#allocation9], 1 }
 0x347   :  { %3978 = vsyncpa [#allocation12], 1 }
 0x348   :  { %3979 = vsyncpa [#allocation7], 1 }

</bundles_post_ra>
